<compile_context>
chip_gen: v7x
topology: tpu7x:2x2x1
jax: 0.10.0
libtpu: 0.0.40
codegen_flags: <defaults>
</compile_context>

<pallas_src>
import numpy as np
import jax
import jax.numpy as jnp
from jax.experimental import pallas as pl
from jax.experimental.pallas import tpu as pltpu

# ---- model constants (from MyModel.__init__ defaults) -----------------------
TAGSET = 4          # tag_to_ix = {'non-cache':0, 'cache':1, '<START>':2, '<STOP>':3}
START_IDX = 2
STOP_IDX = 3
HIDDEN = 10         # hiddenSize default
INPUT_SIZE = 1      # inputSize default
SEQ = 8             # example sequence length
NEG_INF = -10000.0

# ---- packed parameter slab layout: rows of a (SLAB_ROWS, 128) f32 array -----
R_WHH0 = 0          # rows [0,10)   cols [0,40)  : whh0^T                (H, 4H)
R_W1CAT = 16        # rows [16,36)  cols [0,40)  : [wih1^T ; whh1^T]     (2H, 4H)
R_WLIN = 40         # rows [40,50)  cols [0,4)   : wlin^T                (H, TAGSET)
R_BLIN = 50         # row  50       cols [0,4)   : blin
R_TSTOP = 51        # row  51       cols [0,4)   : trans[STOP, :]
R_TRANST = 52       # rows [52,56)  cols [0,4)   : trans^T  ([prev, next])
R_WIH0 = 56         # row  56       cols [0,40)  : wih0^T   (INPUT_SIZE == 1)
R_B0 = 57           # row  57       cols [0,40)  : b_ih0 + b_hh0
R_B1 = 58           # row  58       cols [0,40)  : b_ih1 + b_hh1
SLAB_ROWS = 64

# ---- packed output slab layout: (OUT_ROWS, 128) f32, one unmasked store -----
#   rows [0,T)  cols [0,4)       : emission feats
#   rows [0,T)  cols [4,8)       : Viterbi backpointers  (small ints, exact f32)
#   row  T      cols [0,4)       : terminal variable
#   row  T      col  4           : best path score
#   row  T      cols [8,8+T)     : decoded best path     (small ints, exact f32)


def _lstm_crf_viterbi_kernel(x_ref, p_ref, out_ref):
    H = HIDDEN
    H4 = 4 * H
    T = x_ref.shape[0]
    f32 = jnp.float32

    # ---- unpack parameters from the single slab (static slices) -------------
    whh0 = p_ref[R_WHH0:R_WHH0 + H, 0:H4]                  # (H, 4H)
    w1cat = p_ref[R_W1CAT:R_W1CAT + 2 * H, 0:H4]           # (2H, 4H)
    wlin = p_ref[R_WLIN:R_WLIN + H, 0:TAGSET]              # (H, TAGSET)
    blin = p_ref[R_BLIN:R_BLIN + 1, 0:TAGSET]              # (1, TAGSET)
    trans_stop = p_ref[R_TSTOP:R_TSTOP + 1, 0:TAGSET]      # (1, TAGSET) = trans[STOP,:]
    transT = p_ref[R_TRANST:R_TRANST + TAGSET, 0:TAGSET]   # (TAGSET, TAGSET) [prev,next]
    wih0 = p_ref[R_WIH0:R_WIH0 + 1, 0:H4]                  # (1, 4H)
    b0 = p_ref[R_B0:R_B0 + 1, 0:H4]                        # (1, 4H)
    b1 = p_ref[R_B1:R_B1 + 1, 0:H4]                        # (1, 4H)

    # ---- hoisted constants (iotas / masks built once, reused in the loops) --
    lane4h = jax.lax.broadcasted_iota(jnp.int32, (1, H4), 1)
    # single-EUP-push gate trick: sigmoid(2x) on the "g" slice, sigmoid(x) else.
    gate_scale = jnp.where((lane4h >= 2 * H) & (lane4h < 3 * H), 2.0, 1.0).astype(f32)
    lane_tag = jax.lax.broadcasted_iota(jnp.int32, (1, TAGSET), 1)
    sub_tag = jax.lax.broadcasted_iota(jnp.int32, (TAGSET, TAGSET), 0)
    diag = sub_tag == jax.lax.broadcasted_iota(jnp.int32, (TAGSET, TAGSET), 1)
    sub_col = jax.lax.broadcasted_iota(jnp.int32, (TAGSET, 1), 0)
    time_iota = jax.lax.broadcasted_iota(jnp.int32, (1, T), 1)

    # Layer-0 input-to-gates + bias hoisted out of the recurrence.
    # INPUT_SIZE == 1, so the contraction is a (T,1)*(1,4H) broadcast multiply.
    xg0_all = x_ref[...] * wih0 + b0                       # (T, 4H)

    def cell(gates, c):
        """One LSTM cell given the (1,4H) pre-activation and (1,H) cell state."""
        s = jax.nn.sigmoid(gates * gate_scale)             # one EUP push
        i = s[:, 0:H]
        f = s[:, H:2 * H]
        g = 2.0 * s[:, 2 * H:3 * H] - 1.0                  # tanh(x) = 2*sigmoid(2x) - 1
        o = s[:, 3 * H:4 * H]
        c_new = f * c + i * g
        h_new = o * jnp.tanh(c_new)
        return h_new, c_new

    # TODO(synk): for (1, K<=20) contractions the MXU gives no throughput win
    # (pure systolic fill + pop latency); a VPU broadcast-MAC formulation may be
    # strictly lower latency -- verify with pl.lower_as_mlir before switching.

    h0 = jnp.zeros((1, H), f32)
    c0 = jnp.zeros((1, H), f32)
    h1 = jnp.zeros((1, H), f32)
    c1 = jnp.zeros((1, H), f32)
    fwd_col = jnp.where(sub_col == START_IDX, 0.0, NEG_INF).astype(f32)  # (TAGSET,1)
    fwd_row = jnp.zeros((1, TAGSET), f32)
    feat_rows = []
    bp_rows = []

    for t in range(T):
        # ---- LSTM layer 0 ----------------------------------------------------
        gates0 = xg0_all[t:t + 1, :] + jnp.dot(h0, whh0, preferred_element_type=f32)
        h0, c0 = cell(gates0, c0)
        # ---- LSTM layer 1: fused input+hidden matmul (one MXU round trip) -----
        hcat = jnp.concatenate([h0, h1], axis=1)                         # (1, 2H)
        gates1 = jnp.dot(hcat, w1cat, preferred_element_type=f32) + b1
        h1, c1 = cell(gates1, c1)
        # ---- emission feature for this step -----------------------------------
        f_t = jnp.dot(h1, wlin, preferred_element_type=f32) + blin      # (1, TAGSET)
        feat_rows.append(f_t)
        # ---- Viterbi step t (hides under the LSTM MXU/EUP latency) ------------
        nt = fwd_col + transT                                           # [prev, next]
        vmax = jnp.max(nt, axis=0, keepdims=True)                       # (1, TAGSET)
        bp_rows.append(jnp.min(jnp.where(nt >= vmax, sub_tag, TAGSET),
                               axis=0, keepdims=True))                  # first argmax
        fwd_row = vmax + f_t                                            # (1, TAGSET)
        # row -> column via diagonal mask + lane reduce (no relayout/reshape).
        fwd_col = jnp.sum(
            jnp.where(diag, jnp.broadcast_to(fwd_row, (TAGSET, TAGSET)), 0.0),
            axis=1, keepdims=True)                                      # (TAGSET, 1)

    # ---- terminal step -------------------------------------------------------
    term = fwd_row + trans_stop                                         # (1, TAGSET)
    tmax = jnp.max(term, axis=1, keepdims=True)                         # (1,1) score
    best = jnp.min(jnp.where(term >= tmax, lane_tag, TAGSET),
                   axis=1, keepdims=True)                               # (1,1) int32

    # ---- in-kernel backpointer chase (vector one-hot selects) ---------------
    path = jnp.where(time_iota == (T - 1), best, 0)                     # (1, T) int32
    for t in range(T - 1, 0, -1):
        best = jnp.sum(jnp.where(lane_tag == best, bp_rows[t], 0),
                       axis=1, keepdims=True)
        path = path + jnp.where(time_iota == (t - 1), best, 0)
    # TODO(synk): the PyTorch `assert start == START_TAG` (bptrs[0][path[0]]) is
    # verified host-side by the reference check, not asserted in-kernel.

    # ---- assemble ONE lane-dense output slab and store it once ---------------
    feats_all = jnp.concatenate(feat_rows, axis=0)                      # (T, TAGSET)
    bp_all = jnp.concatenate(bp_rows, axis=0).astype(f32)               # (T, TAGSET)
    top = jnp.concatenate(
        [feats_all, bp_all, jnp.zeros((T, 128 - 2 * TAGSET), f32)], axis=1)   # (T,128)
    misc = jnp.concatenate(
        [term, tmax, jnp.zeros((1, TAGSET - 1), f32), path.astype(f32),
         jnp.zeros((1, 128 - 2 * TAGSET - T), f32)], axis=1)            # (1, 128)
    pieces = [top, misc]
    pad_rows = out_ref.shape[0] - T - 1
    if pad_rows > 0:
        pieces.append(jnp.zeros((pad_rows, 128), f32))
    out_ref[...] = jnp.concatenate(pieces, axis=0)        # single unmasked store


def lstm_crf_forward(x_flat, param_slab):
    """x_flat: (T, INPUT_SIZE) f32; param_slab: (SLAB_ROWS, 128) f32 from pack_params.

    Returns one (OUT_ROWS, 128) f32 slab (see layout above)."""
    T = x_flat.shape[0]
    out_rows = ((T + 1 + 7) // 8) * 8
    vmem = lambda: pl.BlockSpec(memory_space=pltpu.MemorySpace.VMEM)
    # TODO(synk): for many independent sequences, add a leading "parallel" grid
    # axis over sequences (uses both v7x TensorCores, amortizes launch/DMA);
    # for much larger T switch the unrolled loops to lax.fori_loop.
    return pl.pallas_call(
        _lstm_crf_viterbi_kernel,
        out_shape=jax.ShapeDtypeStruct((out_rows, 128), jnp.float32),
        in_specs=[vmem(), vmem()],
        out_specs=vmem(),
    )(x_flat, param_slab)


def build_params(key):
    """Deterministic parameter init matching PyTorch shapes (uniform +/- 1/sqrt(H))."""
    ks = jax.random.split(key, 11)
    s = 1.0 / np.sqrt(HIDDEN)

    def u(k, shape):
        return jax.random.uniform(k, shape, jnp.float32, -s, s)

    w_ih0 = u(ks[0], (4 * HIDDEN, INPUT_SIZE))
    w_hh0 = u(ks[1], (4 * HIDDEN, HIDDEN))
    b_ih0 = u(ks[2], (4 * HIDDEN,))
    b_hh0 = u(ks[3], (4 * HIDDEN,))
    w_ih1 = u(ks[4], (4 * HIDDEN, HIDDEN))
    w_hh1 = u(ks[5], (4 * HIDDEN, HIDDEN))
    b_ih1 = u(ks[6], (4 * HIDDEN,))
    b_hh1 = u(ks[7], (4 * HIDDEN,))
    w_lin = u(ks[8], (TAGSET, HIDDEN))
    b_lin = u(ks[9], (TAGSET,))

    trans = jax.random.normal(ks[10], (TAGSET, TAGSET), jnp.float32)
    trans = trans.at[START_IDX, :].set(NEG_INF)            # nothing into START
    trans = trans.at[:, STOP_IDX].set(NEG_INF)             # nothing out of STOP

    return dict(
        wih0=w_ih0.T, whh0=w_hh0.T, b0=(b_ih0 + b_hh0).reshape(1, -1),
        wih1=w_ih1.T, whh1=w_hh1.T, b1=(b_ih1 + b_hh1).reshape(1, -1),
        wlin=w_lin.T, blin=b_lin.reshape(1, -1), trans=trans,
    )


def pack_params(p):
    """Pack all weights into one lane-dense (SLAB_ROWS, 128) f32 slab."""
    H4 = 4 * HIDDEN
    slab = np.zeros((SLAB_ROWS, 128), np.float32)
    slab[R_WHH0:R_WHH0 + HIDDEN, 0:H4] = np.asarray(p['whh0'])
    w1cat = np.concatenate([np.asarray(p['wih1']), np.asarray(p['whh1'])], axis=0)
    slab[R_W1CAT:R_W1CAT + 2 * HIDDEN, 0:H4] = w1cat
    slab[R_WLIN:R_WLIN + HIDDEN, 0:TAGSET] = np.asarray(p['wlin'])
    slab[R_BLIN, 0:TAGSET] = np.asarray(p['blin'])[0]
    trans = np.asarray(p['trans'])
    slab[R_TSTOP, 0:TAGSET] = trans[STOP_IDX, :]
    slab[R_TRANST:R_TRANST + TAGSET, 0:TAGSET] = trans.T
    slab[R_WIH0, 0:H4] = np.asarray(p['wih0'])[0]
    slab[R_B0, 0:H4] = np.asarray(p['b0'])[0]
    slab[R_B1, 0:H4] = np.asarray(p['b1'])[0]
    return jnp.asarray(slab)


def unpack_outputs(out, T):
    out = np.asarray(out)
    feats = out[0:T, 0:TAGSET]
    bptrs = out[0:T, TAGSET:2 * TAGSET].astype(np.int64)
    term = out[T, 0:TAGSET]
    score = float(out[T, TAGSET])
    path = [int(v) for v in out[T, 2 * TAGSET:2 * TAGSET + T]]
    return feats, bptrs, term, score, path


# ---- pure-NumPy reference (mirrors MyModel.forward) --------------------------
def _ref_cell(xg, h, c, whh, b):
    gates = xg + h @ whh + b
    H = HIDDEN
    sig = 1.0 / (1.0 + np.exp(-gates))
    th = np.tanh(gates)
    i, f, g, o = sig[:H], sig[H:2 * H], th[2 * H:3 * H], sig[3 * H:4 * H]
    c_new = f * c + i * g
    h_new = o * np.tanh(c_new)
    return h_new, c_new


def reference_forward(x_flat, params):
    x = np.asarray(x_flat, np.float32)
    p = {k: np.asarray(v, np.float32) for k, v in params.items()}
    T = x.shape[0]
    h0 = np.zeros(HIDDEN, np.float32); c0 = np.zeros(HIDDEN, np.float32)
    h1 = np.zeros(HIDDEN, np.float32); c1 = np.zeros(HIDDEN, np.float32)
    feats = np.zeros((T, TAGSET), np.float32)
    for t in range(T):
        h0, c0 = _ref_cell(x[t] @ p['wih0'], h0, c0, p['whh0'], p['b0'][0])
        h1, c1 = _ref_cell(h0 @ p['wih1'], h1, c1, p['whh1'], p['b1'][0])
        feats[t] = h1 @ p['wlin'] + p['blin'][0]
    trans = p['trans']
    fwd = np.full(TAGSET, NEG_INF, np.float32); fwd[START_IDX] = 0.0
    bptrs = np.zeros((T, TAGSET), np.int64)
    for t in range(T):
        nt = fwd[None, :] + trans                              # [next, prev]
        bptrs[t] = np.argmax(nt, axis=1)
        fwd = nt[np.arange(TAGSET), bptrs[t]] + feats[t]
    term = fwd + trans[STOP_IDX]
    best = int(np.argmax(term))
    score = float(term[best])
    best_path = [best]
    for t in range(T - 1, -1, -1):
        best = int(bptrs[t, best])
        best_path.append(best)
    start = best_path.pop()
    assert start == START_IDX
    best_path.reverse()
    return feats, score, best_path


if __name__ == "__main__":
    key = jax.random.PRNGKey(0)
    pkey, xkey = jax.random.split(key)
    params = build_params(pkey)
    slab = pack_params(params)

    # module input: (batch=1, seq=SEQ, input_size=1), batch_first=True
    x = jax.random.normal(xkey, (1, SEQ, INPUT_SIZE), jnp.float32)
    x_flat = x.reshape(SEQ, INPUT_SIZE)

    out = lstm_crf_forward(x_flat, slab)
    out = jax.block_until_ready(out)

    feats, bptrs, term, score, path = unpack_outputs(out, SEQ)
    ref_feats, ref_score, ref_path = reference_forward(x_flat, params)

    assert len(path) == SEQ
    assert np.isfinite(score)
    assert np.allclose(feats, ref_feats, rtol=1e-4, atol=1e-4)
    assert abs(score - ref_score) < 1e-3
    assert path == ref_path

    print("KERNEL_OK")
</pallas_src>

<mosaic_0001>
module attributes {stable_mosaic.version = 11 : i64} {
  func.func @_lstm_crf_viterbi_kernel(%arg0: memref<8x1xf32, #tpu.memory_space<vmem>>, %arg1: memref<64x128xf32, #tpu.memory_space<vmem>>, %arg2: memref<16x128xf32, #tpu.memory_space<vmem>>) attributes {dimension_semantics = [], scalar_prefetch = 0 : i64, scratch_operands = 0 : i64, tpu.core_type = #tpu.core_type<tc>} {
    %c0 = arith.constant 0 : index
    %c0_0 = arith.constant 0 : index
    %0 = vector.load %arg1[%c0, %c0_0] : memref<64x128xf32, #tpu.memory_space<vmem>>, vector<10x40xf32>
    %c16 = arith.constant 16 : index
    %c0_1 = arith.constant 0 : index
    %1 = vector.load %arg1[%c16, %c0_1] : memref<64x128xf32, #tpu.memory_space<vmem>>, vector<20x40xf32>
    %c40 = arith.constant 40 : index
    %c0_2 = arith.constant 0 : index
    %2 = vector.load %arg1[%c40, %c0_2] : memref<64x128xf32, #tpu.memory_space<vmem>>, vector<10x4xf32>
    %c50 = arith.constant 50 : index
    %c0_3 = arith.constant 0 : index
    %3 = vector.load %arg1[%c50, %c0_3] : memref<64x128xf32, #tpu.memory_space<vmem>>, vector<1x4xf32>
    %c51 = arith.constant 51 : index
    %c0_4 = arith.constant 0 : index
    %4 = vector.load %arg1[%c51, %c0_4] : memref<64x128xf32, #tpu.memory_space<vmem>>, vector<1x4xf32>
    %c52 = arith.constant 52 : index
    %c0_5 = arith.constant 0 : index
    %5 = vector.load %arg1[%c52, %c0_5] : memref<64x128xf32, #tpu.memory_space<vmem>>, vector<4x4xf32>
    %c56 = arith.constant 56 : index
    %c0_6 = arith.constant 0 : index
    %6 = vector.load %arg1[%c56, %c0_6] : memref<64x128xf32, #tpu.memory_space<vmem>>, vector<1x40xf32>
    %c57 = arith.constant 57 : index
    %c0_7 = arith.constant 0 : index
    %7 = vector.load %arg1[%c57, %c0_7] : memref<64x128xf32, #tpu.memory_space<vmem>>, vector<1x40xf32>
    %c58 = arith.constant 58 : index
    %c0_8 = arith.constant 0 : index
    %8 = vector.load %arg1[%c58, %c0_8] : memref<64x128xf32, #tpu.memory_space<vmem>>, vector<1x40xf32>
    %9 = tpu.iota {dimensions = array<i32: 1>} : vector<1x40xi32>
    %c20_i32 = arith.constant 20 : i32
    %10 = vector.broadcast %c20_i32 : i32 to vector<1x40xi32>
    %11 = arith.cmpi sge, %9, %10 : vector<1x40xi32>
    %c30_i32 = arith.constant 30 : i32
    %12 = vector.broadcast %c30_i32 : i32 to vector<1x40xi32>
    %13 = arith.cmpi slt, %9, %12 : vector<1x40xi32>
    %14 = arith.andi %11, %13 : vector<1x40xi1>
    %cst = arith.constant 2.000000e+00 : f32
    %cst_9 = arith.constant 1.000000e+00 : f32
    %15 = vector.broadcast %cst : f32 to vector<1x40xf32>
    %16 = vector.broadcast %cst_9 : f32 to vector<1x40xf32>
    %17 = arith.select %14, %15, %16 : vector<1x40xi1>, vector<1x40xf32>
    %18 = tpu.iota {dimensions = array<i32: 1>} : vector<1x4xi32>
    %19 = tpu.iota {dimensions = array<i32: 0>} : vector<4x4xi32>
    %20 = tpu.iota {dimensions = array<i32: 1>} : vector<4x4xi32>
    %21 = arith.cmpi eq, %19, %20 : vector<4x4xi32>
    %22 = tpu.iota {dimensions = array<i32: 0>} : vector<4x1xi32>
    %23 = tpu.iota {dimensions = array<i32: 1>} : vector<1x8xi32>
    %c0_10 = arith.constant 0 : index
    %c0_11 = arith.constant 0 : index
    %24 = vector.load %arg0[%c0_10, %c0_11] : memref<8x1xf32, #tpu.memory_space<vmem>>, vector<8x1xf32>
    %25 = vector.broadcast %24 : vector<8x1xf32> to vector<8x40xf32>
    %26 = vector.broadcast %6 : vector<1x40xf32> to vector<8x40xf32>
    %27 = arith.mulf %25, %26 : vector<8x40xf32>
    %28 = vector.broadcast %7 : vector<1x40xf32> to vector<8x40xf32>
    %29 = arith.addf %27, %28 : vector<8x40xf32>
    %cst_12 = arith.constant 0.000000e+00 : f32
    %30 = vector.broadcast %cst_12 : f32 to vector<1x10xf32>
    %cst_13 = arith.constant 0.000000e+00 : f32
    %31 = vector.broadcast %cst_13 : f32 to vector<1x10xf32>
    %cst_14 = arith.constant 0.000000e+00 : f32
    %32 = vector.broadcast %cst_14 : f32 to vector<1x10xf32>
    %cst_15 = arith.constant 0.000000e+00 : f32
    %33 = vector.broadcast %cst_15 : f32 to vector<1x10xf32>
    %c2_i32 = arith.constant 2 : i32
    %34 = vector.broadcast %c2_i32 : i32 to vector<4x1xi32>
    %35 = arith.cmpi eq, %22, %34 : vector<4x1xi32>
    %cst_16 = arith.constant 0.000000e+00 : f32
    %cst_17 = arith.constant -1.000000e+04 : f32
    %36 = vector.broadcast %cst_16 : f32 to vector<4x1xf32>
    %37 = vector.broadcast %cst_17 : f32 to vector<4x1xf32>
    %38 = arith.select %35, %36, %37 : vector<4x1xi1>, vector<4x1xf32>
    %39 = vector.extract_strided_slice %29 {offsets = [0, 0], sizes = [1, 40], strides = [1, 1]} : vector<8x40xf32> to vector<1x40xf32>
    %cst_18 = arith.constant dense<0.000000e+00> : vector<1x40xf32>
    %40 = tpu.matmul %30, %0, %cst_18 {dimension_numbers = #tpu.dot_dimension_numbers<[1], [0], [0], [1], [0, 0, 1, 1], [], []>} : vector<1x10xf32>, vector<10x40xf32>, vector<1x40xf32> -> vector<1x40xf32>
    %41 = arith.addf %39, %40 : vector<1x40xf32>
    %42 = arith.mulf %41, %17 : vector<1x40xf32>
    %43 = arith.negf %42 : vector<1x40xf32>
    %44 = math.exp %43 : vector<1x40xf32>
    %cst_19 = arith.constant 1.000000e+00 : f32
    %45 = vector.broadcast %cst_19 : f32 to vector<1x40xf32>
    %46 = arith.addf %45, %44 : vector<1x40xf32>
    %47 = arith.divf %45, %46 : vector<1x40xf32>
    %48 = vector.extract_strided_slice %47 {offsets = [0, 0], sizes = [1, 10], strides = [1, 1]} : vector<1x40xf32> to vector<1x10xf32>
    %49 = vector.extract_strided_slice %47 {offsets = [0, 10], sizes = [1, 10], strides = [1, 1]} : vector<1x40xf32> to vector<1x10xf32>
    %50 = vector.extract_strided_slice %47 {offsets = [0, 20], sizes = [1, 10], strides = [1, 1]} : vector<1x40xf32> to vector<1x10xf32>
    %cst_20 = arith.constant 2.000000e+00 : f32
    %51 = vector.broadcast %cst_20 : f32 to vector<1x10xf32>
    %52 = arith.mulf %51, %50 : vector<1x10xf32>
    %cst_21 = arith.constant 1.000000e+00 : f32
    %53 = vector.broadcast %cst_21 : f32 to vector<1x10xf32>
    %54 = arith.subf %52, %53 : vector<1x10xf32>
    %55 = vector.extract_strided_slice %47 {offsets = [0, 30], sizes = [1, 10], strides = [1, 1]} : vector<1x40xf32> to vector<1x10xf32>
    %56 = arith.mulf %49, %31 : vector<1x10xf32>
    %57 = arith.mulf %48, %54 : vector<1x10xf32>
    %58 = arith.addf %56, %57 : vector<1x10xf32>
    %59 = math.tanh %58 : vector<1x10xf32>
    %60 = arith.mulf %55, %59 : vector<1x10xf32>
    %61 = tpu.concatenate %60, %32 in 1 : vector<1x10xf32>, vector<1x10xf32> -> vector<1x20xf32>
    %cst_22 = arith.constant dense<0.000000e+00> : vector<1x40xf32>
    %62 = tpu.matmul %61, %1, %cst_22 {dimension_numbers = #tpu.dot_dimension_numbers<[1], [0], [0], [1], [0, 0, 1, 1], [], []>} : vector<1x20xf32>, vector<20x40xf32>, vector<1x40xf32> -> vector<1x40xf32>
    %63 = arith.addf %62, %8 : vector<1x40xf32>
    %64 = arith.mulf %63, %17 : vector<1x40xf32>
    %65 = arith.negf %64 : vector<1x40xf32>
    %66 = math.exp %65 : vector<1x40xf32>
    %cst_23 = arith.constant 1.000000e+00 : f32
    %67 = vector.broadcast %cst_23 : f32 to vector<1x40xf32>
    %68 = arith.addf %67, %66 : vector<1x40xf32>
    %69 = arith.divf %67, %68 : vector<1x40xf32>
    %70 = vector.extract_strided_slice %69 {offsets = [0, 0], sizes = [1, 10], strides = [1, 1]} : vector<1x40xf32> to vector<1x10xf32>
    %71 = vector.extract_strided_slice %69 {offsets = [0, 10], sizes = [1, 10], strides = [1, 1]} : vector<1x40xf32> to vector<1x10xf32>
    %72 = vector.extract_strided_slice %69 {offsets = [0, 20], sizes = [1, 10], strides = [1, 1]} : vector<1x40xf32> to vector<1x10xf32>
    %cst_24 = arith.constant 2.000000e+00 : f32
    %73 = vector.broadcast %cst_24 : f32 to vector<1x10xf32>
    %74 = arith.mulf %73, %72 : vector<1x10xf32>
    %cst_25 = arith.constant 1.000000e+00 : f32
    %75 = vector.broadcast %cst_25 : f32 to vector<1x10xf32>
    %76 = arith.subf %74, %75 : vector<1x10xf32>
    %77 = vector.extract_strided_slice %69 {offsets = [0, 30], sizes = [1, 10], strides = [1, 1]} : vector<1x40xf32> to vector<1x10xf32>
    %78 = arith.mulf %71, %33 : vector<1x10xf32>
    %79 = arith.mulf %70, %76 : vector<1x10xf32>
    %80 = arith.addf %78, %79 : vector<1x10xf32>
    %81 = math.tanh %80 : vector<1x10xf32>
    %82 = arith.mulf %77, %81 : vector<1x10xf32>
    %cst_26 = arith.constant dense<0.000000e+00> : vector<1x4xf32>
    %83 = tpu.matmul %82, %2, %cst_26 {dimension_numbers = #tpu.dot_dimension_numbers<[1], [0], [0], [1], [0, 0, 1, 1], [], []>} : vector<1x10xf32>, vector<10x4xf32>, vector<1x4xf32> -> vector<1x4xf32>
    %84 = arith.addf %83, %3 : vector<1x4xf32>
    %85 = vector.broadcast %38 : vector<4x1xf32> to vector<4x4xf32>
    %86 = arith.addf %85, %5 : vector<4x4xf32>
    %cst_27 = arith.constant dense<0xFF800000> : vector<4xf32>
    %87 = vector.multi_reduction <maximumf>, %86, %cst_27 [0] : vector<4x4xf32> to vector<4xf32>
    %88 = vector.shape_cast %87 : vector<4xf32> to vector<1x4xf32>
    %89 = vector.broadcast %88 : vector<1x4xf32> to vector<4x4xf32>
    %90 = arith.cmpf oge, %86, %89 : vector<4x4xf32>
    %c4_i32 = arith.constant 4 : i32
    %91 = vector.broadcast %c4_i32 : i32 to vector<4x4xi32>
    %92 = arith.select %90, %19, %91 : vector<4x4xi1>, vector<4x4xi32>
    %cst_28 = arith.constant dense<2147483647> : vector<4xi32>
    %93 = vector.multi_reduction <minsi>, %92, %cst_28 [0] : vector<4x4xi32> to vector<4xi32>
    %94 = vector.shape_cast %93 : vector<4xi32> to vector<1x4xi32>
    %95 = arith.addf %88, %84 : vector<1x4xf32>
    %96 = vector.shape_cast %95 : vector<1x4xf32> to vector<1x4xf32>
    %97 = vector.broadcast %96 : vector<1x4xf32> to vector<4x4xf32>
    %cst_29 = arith.constant 0.000000e+00 : f32
    %98 = vector.broadcast %cst_29 : f32 to vector<4x4xf32>
    %99 = arith.select %21, %97, %98 : vector<4x4xi1>, vector<4x4xf32>
    %cst_30 = arith.constant dense<0.000000e+00> : vector<4xf32>
    %100 = vector.multi_reduction <add>, %99, %cst_30 [1] : vector<4x4xf32> to vector<4xf32>
    %101 = vector.shape_cast %100 : vector<4xf32> to vector<4x1xf32>
    %102 = vector.extract_strided_slice %29 {offsets = [1, 0], sizes = [1, 40], strides = [1, 1]} : vector<8x40xf32> to vector<1x40xf32>
    %cst_31 = arith.constant dense<0.000000e+00> : vector<1x40xf32>
    %103 = tpu.matmul %60, %0, %cst_31 {dimension_numbers = #tpu.dot_dimension_numbers<[1], [0], [0], [1], [0, 0, 1, 1], [], []>} : vector<1x10xf32>, vector<10x40xf32>, vector<1x40xf32> -> vector<1x40xf32>
    %104 = arith.addf %102, %103 : vector<1x40xf32>
    %105 = arith.mulf %104, %17 : vector<1x40xf32>
    %106 = arith.negf %105 : vector<1x40xf32>
    %107 = math.exp %106 : vector<1x40xf32>
    %cst_32 = arith.constant 1.000000e+00 : f32
    %108 = vector.broadcast %cst_32 : f32 to vector<1x40xf32>
    %109 = arith.addf %108, %107 : vector<1x40xf32>
    %110 = arith.divf %108, %109 : vector<1x40xf32>
    %111 = vector.extract_strided_slice %110 {offsets = [0, 0], sizes = [1, 10], strides = [1, 1]} : vector<1x40xf32> to vector<1x10xf32>
    %112 = vector.extract_strided_slice %110 {offsets = [0, 10], sizes = [1, 10], strides = [1, 1]} : vector<1x40xf32> to vector<1x10xf32>
    %113 = vector.extract_strided_slice %110 {offsets = [0, 20], sizes = [1, 10], strides = [1, 1]} : vector<1x40xf32> to vector<1x10xf32>
    %cst_33 = arith.constant 2.000000e+00 : f32
    %114 = vector.broadcast %cst_33 : f32 to vector<1x10xf32>
    %115 = arith.mulf %114, %113 : vector<1x10xf32>
    %cst_34 = arith.constant 1.000000e+00 : f32
    %116 = vector.broadcast %cst_34 : f32 to vector<1x10xf32>
    %117 = arith.subf %115, %116 : vector<1x10xf32>
    %118 = vector.extract_strided_slice %110 {offsets = [0, 30], sizes = [1, 10], strides = [1, 1]} : vector<1x40xf32> to vector<1x10xf32>
    %119 = arith.mulf %112, %58 : vector<1x10xf32>
    %120 = arith.mulf %111, %117 : vector<1x10xf32>
    %121 = arith.addf %119, %120 : vector<1x10xf32>
    %122 = math.tanh %121 : vector<1x10xf32>
    %123 = arith.mulf %118, %122 : vector<1x10xf32>
    %124 = tpu.concatenate %123, %82 in 1 : vector<1x10xf32>, vector<1x10xf32> -> vector<1x20xf32>
    %cst_35 = arith.constant dense<0.000000e+00> : vector<1x40xf32>
    %125 = tpu.matmul %124, %1, %cst_35 {dimension_numbers = #tpu.dot_dimension_numbers<[1], [0], [0], [1], [0, 0, 1, 1], [], []>} : vector<1x20xf32>, vector<20x40xf32>, vector<1x40xf32> -> vector<1x40xf32>
    %126 = arith.addf %125, %8 : vector<1x40xf32>
    %127 = arith.mulf %126, %17 : vector<1x40xf32>
    %128 = arith.negf %127 : vector<1x40xf32>
    %129 = math.exp %128 : vector<1x40xf32>
    %cst_36 = arith.constant 1.000000e+00 : f32
    %130 = vector.broadcast %cst_36 : f32 to vector<1x40xf32>
    %131 = arith.addf %130, %129 : vector<1x40xf32>
    %132 = arith.divf %130, %131 : vector<1x40xf32>
    %133 = vector.extract_strided_slice %132 {offsets = [0, 0], sizes = [1, 10], strides = [1, 1]} : vector<1x40xf32> to vector<1x10xf32>
    %134 = vector.extract_strided_slice %132 {offsets = [0, 10], sizes = [1, 10], strides = [1, 1]} : vector<1x40xf32> to vector<1x10xf32>
    %135 = vector.extract_strided_slice %132 {offsets = [0, 20], sizes = [1, 10], strides = [1, 1]} : vector<1x40xf32> to vector<1x10xf32>
    %cst_37 = arith.constant 2.000000e+00 : f32
    %136 = vector.broadcast %cst_37 : f32 to vector<1x10xf32>
    %137 = arith.mulf %136, %135 : vector<1x10xf32>
    %cst_38 = arith.constant 1.000000e+00 : f32
    %138 = vector.broadcast %cst_38 : f32 to vector<1x10xf32>
    %139 = arith.subf %137, %138 : vector<1x10xf32>
    %140 = vector.extract_strided_slice %132 {offsets = [0, 30], sizes = [1, 10], strides = [1, 1]} : vector<1x40xf32> to vector<1x10xf32>
    %141 = arith.mulf %134, %80 : vector<1x10xf32>
    %142 = arith.mulf %133, %139 : vector<1x10xf32>
    %143 = arith.addf %141, %142 : vector<1x10xf32>
    %144 = math.tanh %143 : vector<1x10xf32>
    %145 = arith.mulf %140, %144 : vector<1x10xf32>
    %cst_39 = arith.constant dense<0.000000e+00> : vector<1x4xf32>
    %146 = tpu.matmul %145, %2, %cst_39 {dimension_numbers = #tpu.dot_dimension_numbers<[1], [0], [0], [1], [0, 0, 1, 1], [], []>} : vector<1x10xf32>, vector<10x4xf32>, vector<1x4xf32> -> vector<1x4xf32>
    %147 = arith.addf %146, %3 : vector<1x4xf32>
    %148 = vector.broadcast %101 : vector<4x1xf32> to vector<4x4xf32>
    %149 = arith.addf %148, %5 : vector<4x4xf32>
    %cst_40 = arith.constant dense<0xFF800000> : vector<4xf32>
    %150 = vector.multi_reduction <maximumf>, %149, %cst_40 [0] : vector<4x4xf32> to vector<4xf32>
    %151 = vector.shape_cast %150 : vector<4xf32> to vector<1x4xf32>
    %152 = vector.broadcast %151 : vector<1x4xf32> to vector<4x4xf32>
    %153 = arith.cmpf oge, %149, %152 : vector<4x4xf32>
    %c4_i32_41 = arith.constant 4 : i32
    %154 = vector.broadcast %c4_i32_41 : i32 to vector<4x4xi32>
    %155 = arith.select %153, %19, %154 : vector<4x4xi1>, vector<4x4xi32>
    %cst_42 = arith.constant dense<2147483647> : vector<4xi32>
    %156 = vector.multi_reduction <minsi>, %155, %cst_42 [0] : vector<4x4xi32> to vector<4xi32>
    %157 = vector.shape_cast %156 : vector<4xi32> to vector<1x4xi32>
    %158 = arith.addf %151, %147 : vector<1x4xf32>
    %159 = vector.shape_cast %158 : vector<1x4xf32> to vector<1x4xf32>
    %160 = vector.broadcast %159 : vector<1x4xf32> to vector<4x4xf32>
    %cst_43 = arith.constant 0.000000e+00 : f32
    %161 = vector.broadcast %cst_43 : f32 to vector<4x4xf32>
    %162 = arith.select %21, %160, %161 : vector<4x4xi1>, vector<4x4xf32>
    %cst_44 = arith.constant dense<0.000000e+00> : vector<4xf32>
    %163 = vector.multi_reduction <add>, %162, %cst_44 [1] : vector<4x4xf32> to vector<4xf32>
    %164 = vector.shape_cast %163 : vector<4xf32> to vector<4x1xf32>
    %165 = vector.extract_strided_slice %29 {offsets = [2, 0], sizes = [1, 40], strides = [1, 1]} : vector<8x40xf32> to vector<1x40xf32>
    %cst_45 = arith.constant dense<0.000000e+00> : vector<1x40xf32>
    %166 = tpu.matmul %123, %0, %cst_45 {dimension_numbers = #tpu.dot_dimension_numbers<[1], [0], [0], [1], [0, 0, 1, 1], [], []>} : vector<1x10xf32>, vector<10x40xf32>, vector<1x40xf32> -> vector<1x40xf32>
    %167 = arith.addf %165, %166 : vector<1x40xf32>
    %168 = arith.mulf %167, %17 : vector<1x40xf32>
    %169 = arith.negf %168 : vector<1x40xf32>
    %170 = math.exp %169 : vector<1x40xf32>
    %cst_46 = arith.constant 1.000000e+00 : f32
    %171 = vector.broadcast %cst_46 : f32 to vector<1x40xf32>
    %172 = arith.addf %171, %170 : vector<1x40xf32>
    %173 = arith.divf %171, %172 : vector<1x40xf32>
    %174 = vector.extract_strided_slice %173 {offsets = [0, 0], sizes = [1, 10], strides = [1, 1]} : vector<1x40xf32> to vector<1x10xf32>
    %175 = vector.extract_strided_slice %173 {offsets = [0, 10], sizes = [1, 10], strides = [1, 1]} : vector<1x40xf32> to vector<1x10xf32>
    %176 = vector.extract_strided_slice %173 {offsets = [0, 20], sizes = [1, 10], strides = [1, 1]} : vector<1x40xf32> to vector<1x10xf32>
    %cst_47 = arith.constant 2.000000e+00 : f32
    %177 = vector.broadcast %cst_47 : f32 to vector<1x10xf32>
    %178 = arith.mulf %177, %176 : vector<1x10xf32>
    %cst_48 = arith.constant 1.000000e+00 : f32
    %179 = vector.broadcast %cst_48 : f32 to vector<1x10xf32>
    %180 = arith.subf %178, %179 : vector<1x10xf32>
    %181 = vector.extract_strided_slice %173 {offsets = [0, 30], sizes = [1, 10], strides = [1, 1]} : vector<1x40xf32> to vector<1x10xf32>
    %182 = arith.mulf %175, %121 : vector<1x10xf32>
    %183 = arith.mulf %174, %180 : vector<1x10xf32>
    %184 = arith.addf %182, %183 : vector<1x10xf32>
    %185 = math.tanh %184 : vector<1x10xf32>
    %186 = arith.mulf %181, %185 : vector<1x10xf32>
    %187 = tpu.concatenate %186, %145 in 1 : vector<1x10xf32>, vector<1x10xf32> -> vector<1x20xf32>
    %cst_49 = arith.constant dense<0.000000e+00> : vector<1x40xf32>
    %188 = tpu.matmul %187, %1, %cst_49 {dimension_numbers = #tpu.dot_dimension_numbers<[1], [0], [0], [1], [0, 0, 1, 1], [], []>} : vector<1x20xf32>, vector<20x40xf32>, vector<1x40xf32> -> vector<1x40xf32>
    %189 = arith.addf %188, %8 : vector<1x40xf32>
    %190 = arith.mulf %189, %17 : vector<1x40xf32>
    %191 = arith.negf %190 : vector<1x40xf32>
    %192 = math.exp %191 : vector<1x40xf32>
    %cst_50 = arith.constant 1.000000e+00 : f32
    %193 = vector.broadcast %cst_50 : f32 to vector<1x40xf32>
    %194 = arith.addf %193, %192 : vector<1x40xf32>
    %195 = arith.divf %193, %194 : vector<1x40xf32>
    %196 = vector.extract_strided_slice %195 {offsets = [0, 0], sizes = [1, 10], strides = [1, 1]} : vector<1x40xf32> to vector<1x10xf32>
    %197 = vector.extract_strided_slice %195 {offsets = [0, 10], sizes = [1, 10], strides = [1, 1]} : vector<1x40xf32> to vector<1x10xf32>
    %198 = vector.extract_strided_slice %195 {offsets = [0, 20], sizes = [1, 10], strides = [1, 1]} : vector<1x40xf32> to vector<1x10xf32>
    %cst_51 = arith.constant 2.000000e+00 : f32
    %199 = vector.broadcast %cst_51 : f32 to vector<1x10xf32>
    %200 = arith.mulf %199, %198 : vector<1x10xf32>
    %cst_52 = arith.constant 1.000000e+00 : f32
    %201 = vector.broadcast %cst_52 : f32 to vector<1x10xf32>
    %202 = arith.subf %200, %201 : vector<1x10xf32>
    %203 = vector.extract_strided_slice %195 {offsets = [0, 30], sizes = [1, 10], strides = [1, 1]} : vector<1x40xf32> to vector<1x10xf32>
    %204 = arith.mulf %197, %143 : vector<1x10xf32>
    %205 = arith.mulf %196, %202 : vector<1x10xf32>
    %206 = arith.addf %204, %205 : vector<1x10xf32>
    %207 = math.tanh %206 : vector<1x10xf32>
    %208 = arith.mulf %203, %207 : vector<1x10xf32>
    %cst_53 = arith.constant dense<0.000000e+00> : vector<1x4xf32>
    %209 = tpu.matmul %208, %2, %cst_53 {dimension_numbers = #tpu.dot_dimension_numbers<[1], [0], [0], [1], [0, 0, 1, 1], [], []>} : vector<1x10xf32>, vector<10x4xf32>, vector<1x4xf32> -> vector<1x4xf32>
    %210 = arith.addf %209, %3 : vector<1x4xf32>
    %211 = vector.broadcast %164 : vector<4x1xf32> to vector<4x4xf32>
    %212 = arith.addf %211, %5 : vector<4x4xf32>
    %cst_54 = arith.constant dense<0xFF800000> : vector<4xf32>
    %213 = vector.multi_reduction <maximumf>, %212, %cst_54 [0] : vector<4x4xf32> to vector<4xf32>
    %214 = vector.shape_cast %213 : vector<4xf32> to vector<1x4xf32>
    %215 = vector.broadcast %214 : vector<1x4xf32> to vector<4x4xf32>
    %216 = arith.cmpf oge, %212, %215 : vector<4x4xf32>
    %c4_i32_55 = arith.constant 4 : i32
    %217 = vector.broadcast %c4_i32_55 : i32 to vector<4x4xi32>
    %218 = arith.select %216, %19, %217 : vector<4x4xi1>, vector<4x4xi32>
    %cst_56 = arith.constant dense<2147483647> : vector<4xi32>
    %219 = vector.multi_reduction <minsi>, %218, %cst_56 [0] : vector<4x4xi32> to vector<4xi32>
    %220 = vector.shape_cast %219 : vector<4xi32> to vector<1x4xi32>
    %221 = arith.addf %214, %210 : vector<1x4xf32>
    %222 = vector.shape_cast %221 : vector<1x4xf32> to vector<1x4xf32>
    %223 = vector.broadcast %222 : vector<1x4xf32> to vector<4x4xf32>
    %cst_57 = arith.constant 0.000000e+00 : f32
    %224 = vector.broadcast %cst_57 : f32 to vector<4x4xf32>
    %225 = arith.select %21, %223, %224 : vector<4x4xi1>, vector<4x4xf32>
    %cst_58 = arith.constant dense<0.000000e+00> : vector<4xf32>
    %226 = vector.multi_reduction <add>, %225, %cst_58 [1] : vector<4x4xf32> to vector<4xf32>
    %227 = vector.shape_cast %226 : vector<4xf32> to vector<4x1xf32>
    %228 = vector.extract_strided_slice %29 {offsets = [3, 0], sizes = [1, 40], strides = [1, 1]} : vector<8x40xf32> to vector<1x40xf32>
    %cst_59 = arith.constant dense<0.000000e+00> : vector<1x40xf32>
    %229 = tpu.matmul %186, %0, %cst_59 {dimension_numbers = #tpu.dot_dimension_numbers<[1], [0], [0], [1], [0, 0, 1, 1], [], []>} : vector<1x10xf32>, vector<10x40xf32>, vector<1x40xf32> -> vector<1x40xf32>
    %230 = arith.addf %228, %229 : vector<1x40xf32>
    %231 = arith.mulf %230, %17 : vector<1x40xf32>
    %232 = arith.negf %231 : vector<1x40xf32>
    %233 = math.exp %232 : vector<1x40xf32>
    %cst_60 = arith.constant 1.000000e+00 : f32
    %234 = vector.broadcast %cst_60 : f32 to vector<1x40xf32>
    %235 = arith.addf %234, %233 : vector<1x40xf32>
    %236 = arith.divf %234, %235 : vector<1x40xf32>
    %237 = vector.extract_strided_slice %236 {offsets = [0, 0], sizes = [1, 10], strides = [1, 1]} : vector<1x40xf32> to vector<1x10xf32>
    %238 = vector.extract_strided_slice %236 {offsets = [0, 10], sizes = [1, 10], strides = [1, 1]} : vector<1x40xf32> to vector<1x10xf32>
    %239 = vector.extract_strided_slice %236 {offsets = [0, 20], sizes = [1, 10], strides = [1, 1]} : vector<1x40xf32> to vector<1x10xf32>
    %cst_61 = arith.constant 2.000000e+00 : f32
    %240 = vector.broadcast %cst_61 : f32 to vector<1x10xf32>
    %241 = arith.mulf %240, %239 : vector<1x10xf32>
    %cst_62 = arith.constant 1.000000e+00 : f32
    %242 = vector.broadcast %cst_62 : f32 to vector<1x10xf32>
    %243 = arith.subf %241, %242 : vector<1x10xf32>
    %244 = vector.extract_strided_slice %236 {offsets = [0, 30], sizes = [1, 10], strides = [1, 1]} : vector<1x40xf32> to vector<1x10xf32>
    %245 = arith.mulf %238, %184 : vector<1x10xf32>
    %246 = arith.mulf %237, %243 : vector<1x10xf32>
    %247 = arith.addf %245, %246 : vector<1x10xf32>
    %248 = math.tanh %247 : vector<1x10xf32>
    %249 = arith.mulf %244, %248 : vector<1x10xf32>
    %250 = tpu.concatenate %249, %208 in 1 : vector<1x10xf32>, vector<1x10xf32> -> vector<1x20xf32>
    %cst_63 = arith.constant dense<0.000000e+00> : vector<1x40xf32>
    %251 = tpu.matmul %250, %1, %cst_63 {dimension_numbers = #tpu.dot_dimension_numbers<[1], [0], [0], [1], [0, 0, 1, 1], [], []>} : vector<1x20xf32>, vector<20x40xf32>, vector<1x40xf32> -> vector<1x40xf32>
    %252 = arith.addf %251, %8 : vector<1x40xf32>
    %253 = arith.mulf %252, %17 : vector<1x40xf32>
    %254 = arith.negf %253 : vector<1x40xf32>
    %255 = math.exp %254 : vector<1x40xf32>
    %cst_64 = arith.constant 1.000000e+00 : f32
    %256 = vector.broadcast %cst_64 : f32 to vector<1x40xf32>
    %257 = arith.addf %256, %255 : vector<1x40xf32>
    %258 = arith.divf %256, %257 : vector<1x40xf32>
    %259 = vector.extract_strided_slice %258 {offsets = [0, 0], sizes = [1, 10], strides = [1, 1]} : vector<1x40xf32> to vector<1x10xf32>
    %260 = vector.extract_strided_slice %258 {offsets = [0, 10], sizes = [1, 10], strides = [1, 1]} : vector<1x40xf32> to vector<1x10xf32>
    %261 = vector.extract_strided_slice %258 {offsets = [0, 20], sizes = [1, 10], strides = [1, 1]} : vector<1x40xf32> to vector<1x10xf32>
    %cst_65 = arith.constant 2.000000e+00 : f32
    %262 = vector.broadcast %cst_65 : f32 to vector<1x10xf32>
    %263 = arith.mulf %262, %261 : vector<1x10xf32>
    %cst_66 = arith.constant 1.000000e+00 : f32
    %264 = vector.broadcast %cst_66 : f32 to vector<1x10xf32>
    %265 = arith.subf %263, %264 : vector<1x10xf32>
    %266 = vector.extract_strided_slice %258 {offsets = [0, 30], sizes = [1, 10], strides = [1, 1]} : vector<1x40xf32> to vector<1x10xf32>
    %267 = arith.mulf %260, %206 : vector<1x10xf32>
    %268 = arith.mulf %259, %265 : vector<1x10xf32>
    %269 = arith.addf %267, %268 : vector<1x10xf32>
    %270 = math.tanh %269 : vector<1x10xf32>
    %271 = arith.mulf %266, %270 : vector<1x10xf32>
    %cst_67 = arith.constant dense<0.000000e+00> : vector<1x4xf32>
    %272 = tpu.matmul %271, %2, %cst_67 {dimension_numbers = #tpu.dot_dimension_numbers<[1], [0], [0], [1], [0, 0, 1, 1], [], []>} : vector<1x10xf32>, vector<10x4xf32>, vector<1x4xf32> -> vector<1x4xf32>
    %273 = arith.addf %272, %3 : vector<1x4xf32>
    %274 = vector.broadcast %227 : vector<4x1xf32> to vector<4x4xf32>
    %275 = arith.addf %274, %5 : vector<4x4xf32>
    %cst_68 = arith.constant dense<0xFF800000> : vector<4xf32>
    %276 = vector.multi_reduction <maximumf>, %275, %cst_68 [0] : vector<4x4xf32> to vector<4xf32>
    %277 = vector.shape_cast %276 : vector<4xf32> to vector<1x4xf32>
    %278 = vector.broadcast %277 : vector<1x4xf32> to vector<4x4xf32>
    %279 = arith.cmpf oge, %275, %278 : vector<4x4xf32>
    %c4_i32_69 = arith.constant 4 : i32
    %280 = vector.broadcast %c4_i32_69 : i32 to vector<4x4xi32>
    %281 = arith.select %279, %19, %280 : vector<4x4xi1>, vector<4x4xi32>
    %cst_70 = arith.constant dense<2147483647> : vector<4xi32>
    %282 = vector.multi_reduction <minsi>, %281, %cst_70 [0] : vector<4x4xi32> to vector<4xi32>
    %283 = vector.shape_cast %282 : vector<4xi32> to vector<1x4xi32>
    %284 = arith.addf %277, %273 : vector<1x4xf32>
    %285 = vector.shape_cast %284 : vector<1x4xf32> to vector<1x4xf32>
    %286 = vector.broadcast %285 : vector<1x4xf32> to vector<4x4xf32>
    %cst_71 = arith.constant 0.000000e+00 : f32
    %287 = vector.broadcast %cst_71 : f32 to vector<4x4xf32>
    %288 = arith.select %21, %286, %287 : vector<4x4xi1>, vector<4x4xf32>
    %cst_72 = arith.constant dense<0.000000e+00> : vector<4xf32>
    %289 = vector.multi_reduction <add>, %288, %cst_72 [1] : vector<4x4xf32> to vector<4xf32>
    %290 = vector.shape_cast %289 : vector<4xf32> to vector<4x1xf32>
    %291 = vector.extract_strided_slice %29 {offsets = [4, 0], sizes = [1, 40], strides = [1, 1]} : vector<8x40xf32> to vector<1x40xf32>
    %cst_73 = arith.constant dense<0.000000e+00> : vector<1x40xf32>
    %292 = tpu.matmul %249, %0, %cst_73 {dimension_numbers = #tpu.dot_dimension_numbers<[1], [0], [0], [1], [0, 0, 1, 1], [], []>} : vector<1x10xf32>, vector<10x40xf32>, vector<1x40xf32> -> vector<1x40xf32>
    %293 = arith.addf %291, %292 : vector<1x40xf32>
    %294 = arith.mulf %293, %17 : vector<1x40xf32>
    %295 = arith.negf %294 : vector<1x40xf32>
    %296 = math.exp %295 : vector<1x40xf32>
    %cst_74 = arith.constant 1.000000e+00 : f32
    %297 = vector.broadcast %cst_74 : f32 to vector<1x40xf32>
    %298 = arith.addf %297, %296 : vector<1x40xf32>
    %299 = arith.divf %297, %298 : vector<1x40xf32>
    %300 = vector.extract_strided_slice %299 {offsets = [0, 0], sizes = [1, 10], strides = [1, 1]} : vector<1x40xf32> to vector<1x10xf32>
    %301 = vector.extract_strided_slice %299 {offsets = [0, 10], sizes = [1, 10], strides = [1, 1]} : vector<1x40xf32> to vector<1x10xf32>
    %302 = vector.extract_strided_slice %299 {offsets = [0, 20], sizes = [1, 10], strides = [1, 1]} : vector<1x40xf32> to vector<1x10xf32>
    %cst_75 = arith.constant 2.000000e+00 : f32
    %303 = vector.broadcast %cst_75 : f32 to vector<1x10xf32>
    %304 = arith.mulf %303, %302 : vector<1x10xf32>
    %cst_76 = arith.constant 1.000000e+00 : f32
    %305 = vector.broadcast %cst_76 : f32 to vector<1x10xf32>
    %306 = arith.subf %304, %305 : vector<1x10xf32>
    %307 = vector.extract_strided_slice %299 {offsets = [0, 30], sizes = [1, 10], strides = [1, 1]} : vector<1x40xf32> to vector<1x10xf32>
    %308 = arith.mulf %301, %247 : vector<1x10xf32>
    %309 = arith.mulf %300, %306 : vector<1x10xf32>
    %310 = arith.addf %308, %309 : vector<1x10xf32>
    %311 = math.tanh %310 : vector<1x10xf32>
    %312 = arith.mulf %307, %311 : vector<1x10xf32>
    %313 = tpu.concatenate %312, %271 in 1 : vector<1x10xf32>, vector<1x10xf32> -> vector<1x20xf32>
    %cst_77 = arith.constant dense<0.000000e+00> : vector<1x40xf32>
    %314 = tpu.matmul %313, %1, %cst_77 {dimension_numbers = #tpu.dot_dimension_numbers<[1], [0], [0], [1], [0, 0, 1, 1], [], []>} : vector<1x20xf32>, vector<20x40xf32>, vector<1x40xf32> -> vector<1x40xf32>
    %315 = arith.addf %314, %8 : vector<1x40xf32>
    %316 = arith.mulf %315, %17 : vector<1x40xf32>
    %317 = arith.negf %316 : vector<1x40xf32>
    %318 = math.exp %317 : vector<1x40xf32>
    %cst_78 = arith.constant 1.000000e+00 : f32
    %319 = vector.broadcast %cst_78 : f32 to vector<1x40xf32>
    %320 = arith.addf %319, %318 : vector<1x40xf32>
    %321 = arith.divf %319, %320 : vector<1x40xf32>
    %322 = vector.extract_strided_slice %321 {offsets = [0, 0], sizes = [1, 10], strides = [1, 1]} : vector<1x40xf32> to vector<1x10xf32>
    %323 = vector.extract_strided_slice %321 {offsets = [0, 10], sizes = [1, 10], strides = [1, 1]} : vector<1x40xf32> to vector<1x10xf32>
    %324 = vector.extract_strided_slice %321 {offsets = [0, 20], sizes = [1, 10], strides = [1, 1]} : vector<1x40xf32> to vector<1x10xf32>
    %cst_79 = arith.constant 2.000000e+00 : f32
    %325 = vector.broadcast %cst_79 : f32 to vector<1x10xf32>
    %326 = arith.mulf %325, %324 : vector<1x10xf32>
    %cst_80 = arith.constant 1.000000e+00 : f32
    %327 = vector.broadcast %cst_80 : f32 to vector<1x10xf32>
    %328 = arith.subf %326, %327 : vector<1x10xf32>
    %329 = vector.extract_strided_slice %321 {offsets = [0, 30], sizes = [1, 10], strides = [1, 1]} : vector<1x40xf32> to vector<1x10xf32>
    %330 = arith.mulf %323, %269 : vector<1x10xf32>
    %331 = arith.mulf %322, %328 : vector<1x10xf32>
    %332 = arith.addf %330, %331 : vector<1x10xf32>
    %333 = math.tanh %332 : vector<1x10xf32>
    %334 = arith.mulf %329, %333 : vector<1x10xf32>
    %cst_81 = arith.constant dense<0.000000e+00> : vector<1x4xf32>
    %335 = tpu.matmul %334, %2, %cst_81 {dimension_numbers = #tpu.dot_dimension_numbers<[1], [0], [0], [1], [0, 0, 1, 1], [], []>} : vector<1x10xf32>, vector<10x4xf32>, vector<1x4xf32> -> vector<1x4xf32>
    %336 = arith.addf %335, %3 : vector<1x4xf32>
    %337 = vector.broadcast %290 : vector<4x1xf32> to vector<4x4xf32>
    %338 = arith.addf %337, %5 : vector<4x4xf32>
    %cst_82 = arith.constant dense<0xFF800000> : vector<4xf32>
    %339 = vector.multi_reduction <maximumf>, %338, %cst_82 [0] : vector<4x4xf32> to vector<4xf32>
    %340 = vector.shape_cast %339 : vector<4xf32> to vector<1x4xf32>
    %341 = vector.broadcast %340 : vector<1x4xf32> to vector<4x4xf32>
    %342 = arith.cmpf oge, %338, %341 : vector<4x4xf32>
    %c4_i32_83 = arith.constant 4 : i32
    %343 = vector.broadcast %c4_i32_83 : i32 to vector<4x4xi32>
    %344 = arith.select %342, %19, %343 : vector<4x4xi1>, vector<4x4xi32>
    %cst_84 = arith.constant dense<2147483647> : vector<4xi32>
    %345 = vector.multi_reduction <minsi>, %344, %cst_84 [0] : vector<4x4xi32> to vector<4xi32>
    %346 = vector.shape_cast %345 : vector<4xi32> to vector<1x4xi32>
    %347 = arith.addf %340, %336 : vector<1x4xf32>
    %348 = vector.shape_cast %347 : vector<1x4xf32> to vector<1x4xf32>
    %349 = vector.broadcast %348 : vector<1x4xf32> to vector<4x4xf32>
    %cst_85 = arith.constant 0.000000e+00 : f32
    %350 = vector.broadcast %cst_85 : f32 to vector<4x4xf32>
    %351 = arith.select %21, %349, %350 : vector<4x4xi1>, vector<4x4xf32>
    %cst_86 = arith.constant dense<0.000000e+00> : vector<4xf32>
    %352 = vector.multi_reduction <add>, %351, %cst_86 [1] : vector<4x4xf32> to vector<4xf32>
    %353 = vector.shape_cast %352 : vector<4xf32> to vector<4x1xf32>
    %354 = vector.extract_strided_slice %29 {offsets = [5, 0], sizes = [1, 40], strides = [1, 1]} : vector<8x40xf32> to vector<1x40xf32>
    %cst_87 = arith.constant dense<0.000000e+00> : vector<1x40xf32>
    %355 = tpu.matmul %312, %0, %cst_87 {dimension_numbers = #tpu.dot_dimension_numbers<[1], [0], [0], [1], [0, 0, 1, 1], [], []>} : vector<1x10xf32>, vector<10x40xf32>, vector<1x40xf32> -> vector<1x40xf32>
    %356 = arith.addf %354, %355 : vector<1x40xf32>
    %357 = arith.mulf %356, %17 : vector<1x40xf32>
    %358 = arith.negf %357 : vector<1x40xf32>
    %359 = math.exp %358 : vector<1x40xf32>
    %cst_88 = arith.constant 1.000000e+00 : f32
    %360 = vector.broadcast %cst_88 : f32 to vector<1x40xf32>
    %361 = arith.addf %360, %359 : vector<1x40xf32>
    %362 = arith.divf %360, %361 : vector<1x40xf32>
    %363 = vector.extract_strided_slice %362 {offsets = [0, 0], sizes = [1, 10], strides = [1, 1]} : vector<1x40xf32> to vector<1x10xf32>
    %364 = vector.extract_strided_slice %362 {offsets = [0, 10], sizes = [1, 10], strides = [1, 1]} : vector<1x40xf32> to vector<1x10xf32>
    %365 = vector.extract_strided_slice %362 {offsets = [0, 20], sizes = [1, 10], strides = [1, 1]} : vector<1x40xf32> to vector<1x10xf32>
    %cst_89 = arith.constant 2.000000e+00 : f32
    %366 = vector.broadcast %cst_89 : f32 to vector<1x10xf32>
    %367 = arith.mulf %366, %365 : vector<1x10xf32>
    %cst_90 = arith.constant 1.000000e+00 : f32
    %368 = vector.broadcast %cst_90 : f32 to vector<1x10xf32>
    %369 = arith.subf %367, %368 : vector<1x10xf32>
    %370 = vector.extract_strided_slice %362 {offsets = [0, 30], sizes = [1, 10], strides = [1, 1]} : vector<1x40xf32> to vector<1x10xf32>
    %371 = arith.mulf %364, %310 : vector<1x10xf32>
    %372 = arith.mulf %363, %369 : vector<1x10xf32>
    %373 = arith.addf %371, %372 : vector<1x10xf32>
    %374 = math.tanh %373 : vector<1x10xf32>
    %375 = arith.mulf %370, %374 : vector<1x10xf32>
    %376 = tpu.concatenate %375, %334 in 1 : vector<1x10xf32>, vector<1x10xf32> -> vector<1x20xf32>
    %cst_91 = arith.constant dense<0.000000e+00> : vector<1x40xf32>
    %377 = tpu.matmul %376, %1, %cst_91 {dimension_numbers = #tpu.dot_dimension_numbers<[1], [0], [0], [1], [0, 0, 1, 1], [], []>} : vector<1x20xf32>, vector<20x40xf32>, vector<1x40xf32> -> vector<1x40xf32>
    %378 = arith.addf %377, %8 : vector<1x40xf32>
    %379 = arith.mulf %378, %17 : vector<1x40xf32>
    %380 = arith.negf %379 : vector<1x40xf32>
    %381 = math.exp %380 : vector<1x40xf32>
    %cst_92 = arith.constant 1.000000e+00 : f32
    %382 = vector.broadcast %cst_92 : f32 to vector<1x40xf32>
    %383 = arith.addf %382, %381 : vector<1x40xf32>
    %384 = arith.divf %382, %383 : vector<1x40xf32>
    %385 = vector.extract_strided_slice %384 {offsets = [0, 0], sizes = [1, 10], strides = [1, 1]} : vector<1x40xf32> to vector<1x10xf32>
    %386 = vector.extract_strided_slice %384 {offsets = [0, 10], sizes = [1, 10], strides = [1, 1]} : vector<1x40xf32> to vector<1x10xf32>
    %387 = vector.extract_strided_slice %384 {offsets = [0, 20], sizes = [1, 10], strides = [1, 1]} : vector<1x40xf32> to vector<1x10xf32>
    %cst_93 = arith.constant 2.000000e+00 : f32
    %388 = vector.broadcast %cst_93 : f32 to vector<1x10xf32>
    %389 = arith.mulf %388, %387 : vector<1x10xf32>
    %cst_94 = arith.constant 1.000000e+00 : f32
    %390 = vector.broadcast %cst_94 : f32 to vector<1x10xf32>
    %391 = arith.subf %389, %390 : vector<1x10xf32>
    %392 = vector.extract_strided_slice %384 {offsets = [0, 30], sizes = [1, 10], strides = [1, 1]} : vector<1x40xf32> to vector<1x10xf32>
    %393 = arith.mulf %386, %332 : vector<1x10xf32>
    %394 = arith.mulf %385, %391 : vector<1x10xf32>
    %395 = arith.addf %393, %394 : vector<1x10xf32>
    %396 = math.tanh %395 : vector<1x10xf32>
    %397 = arith.mulf %392, %396 : vector<1x10xf32>
    %cst_95 = arith.constant dense<0.000000e+00> : vector<1x4xf32>
    %398 = tpu.matmul %397, %2, %cst_95 {dimension_numbers = #tpu.dot_dimension_numbers<[1], [0], [0], [1], [0, 0, 1, 1], [], []>} : vector<1x10xf32>, vector<10x4xf32>, vector<1x4xf32> -> vector<1x4xf32>
    %399 = arith.addf %398, %3 : vector<1x4xf32>
    %400 = vector.broadcast %353 : vector<4x1xf32> to vector<4x4xf32>
    %401 = arith.addf %400, %5 : vector<4x4xf32>
    %cst_96 = arith.constant dense<0xFF800000> : vector<4xf32>
    %402 = vector.multi_reduction <maximumf>, %401, %cst_96 [0] : vector<4x4xf32> to vector<4xf32>
    %403 = vector.shape_cast %402 : vector<4xf32> to vector<1x4xf32>
    %404 = vector.broadcast %403 : vector<1x4xf32> to vector<4x4xf32>
    %405 = arith.cmpf oge, %401, %404 : vector<4x4xf32>
    %c4_i32_97 = arith.constant 4 : i32
    %406 = vector.broadcast %c4_i32_97 : i32 to vector<4x4xi32>
    %407 = arith.select %405, %19, %406 : vector<4x4xi1>, vector<4x4xi32>
    %cst_98 = arith.constant dense<2147483647> : vector<4xi32>
    %408 = vector.multi_reduction <minsi>, %407, %cst_98 [0] : vector<4x4xi32> to vector<4xi32>
    %409 = vector.shape_cast %408 : vector<4xi32> to vector<1x4xi32>
    %410 = arith.addf %403, %399 : vector<1x4xf32>
    %411 = vector.shape_cast %410 : vector<1x4xf32> to vector<1x4xf32>
    %412 = vector.broadcast %411 : vector<1x4xf32> to vector<4x4xf32>
    %cst_99 = arith.constant 0.000000e+00 : f32
    %413 = vector.broadcast %cst_99 : f32 to vector<4x4xf32>
    %414 = arith.select %21, %412, %413 : vector<4x4xi1>, vector<4x4xf32>
    %cst_100 = arith.constant dense<0.000000e+00> : vector<4xf32>
    %415 = vector.multi_reduction <add>, %414, %cst_100 [1] : vector<4x4xf32> to vector<4xf32>
    %416 = vector.shape_cast %415 : vector<4xf32> to vector<4x1xf32>
    %417 = vector.extract_strided_slice %29 {offsets = [6, 0], sizes = [1, 40], strides = [1, 1]} : vector<8x40xf32> to vector<1x40xf32>
    %cst_101 = arith.constant dense<0.000000e+00> : vector<1x40xf32>
    %418 = tpu.matmul %375, %0, %cst_101 {dimension_numbers = #tpu.dot_dimension_numbers<[1], [0], [0], [1], [0, 0, 1, 1], [], []>} : vector<1x10xf32>, vector<10x40xf32>, vector<1x40xf32> -> vector<1x40xf32>
    %419 = arith.addf %417, %418 : vector<1x40xf32>
    %420 = arith.mulf %419, %17 : vector<1x40xf32>
    %421 = arith.negf %420 : vector<1x40xf32>
    %422 = math.exp %421 : vector<1x40xf32>
    %cst_102 = arith.constant 1.000000e+00 : f32
    %423 = vector.broadcast %cst_102 : f32 to vector<1x40xf32>
    %424 = arith.addf %423, %422 : vector<1x40xf32>
    %425 = arith.divf %423, %424 : vector<1x40xf32>
    %426 = vector.extract_strided_slice %425 {offsets = [0, 0], sizes = [1, 10], strides = [1, 1]} : vector<1x40xf32> to vector<1x10xf32>
    %427 = vector.extract_strided_slice %425 {offsets = [0, 10], sizes = [1, 10], strides = [1, 1]} : vector<1x40xf32> to vector<1x10xf32>
    %428 = vector.extract_strided_slice %425 {offsets = [0, 20], sizes = [1, 10], strides = [1, 1]} : vector<1x40xf32> to vector<1x10xf32>
    %cst_103 = arith.constant 2.000000e+00 : f32
    %429 = vector.broadcast %cst_103 : f32 to vector<1x10xf32>
    %430 = arith.mulf %429, %428 : vector<1x10xf32>
    %cst_104 = arith.constant 1.000000e+00 : f32
    %431 = vector.broadcast %cst_104 : f32 to vector<1x10xf32>
    %432 = arith.subf %430, %431 : vector<1x10xf32>
    %433 = vector.extract_strided_slice %425 {offsets = [0, 30], sizes = [1, 10], strides = [1, 1]} : vector<1x40xf32> to vector<1x10xf32>
    %434 = arith.mulf %427, %373 : vector<1x10xf32>
    %435 = arith.mulf %426, %432 : vector<1x10xf32>
    %436 = arith.addf %434, %435 : vector<1x10xf32>
    %437 = math.tanh %436 : vector<1x10xf32>
    %438 = arith.mulf %433, %437 : vector<1x10xf32>
    %439 = tpu.concatenate %438, %397 in 1 : vector<1x10xf32>, vector<1x10xf32> -> vector<1x20xf32>
    %cst_105 = arith.constant dense<0.000000e+00> : vector<1x40xf32>
    %440 = tpu.matmul %439, %1, %cst_105 {dimension_numbers = #tpu.dot_dimension_numbers<[1], [0], [0], [1], [0, 0, 1, 1], [], []>} : vector<1x20xf32>, vector<20x40xf32>, vector<1x40xf32> -> vector<1x40xf32>
    %441 = arith.addf %440, %8 : vector<1x40xf32>
    %442 = arith.mulf %441, %17 : vector<1x40xf32>
    %443 = arith.negf %442 : vector<1x40xf32>
    %444 = math.exp %443 : vector<1x40xf32>
    %cst_106 = arith.constant 1.000000e+00 : f32
    %445 = vector.broadcast %cst_106 : f32 to vector<1x40xf32>
    %446 = arith.addf %445, %444 : vector<1x40xf32>
    %447 = arith.divf %445, %446 : vector<1x40xf32>
    %448 = vector.extract_strided_slice %447 {offsets = [0, 0], sizes = [1, 10], strides = [1, 1]} : vector<1x40xf32> to vector<1x10xf32>
    %449 = vector.extract_strided_slice %447 {offsets = [0, 10], sizes = [1, 10], strides = [1, 1]} : vector<1x40xf32> to vector<1x10xf32>
    %450 = vector.extract_strided_slice %447 {offsets = [0, 20], sizes = [1, 10], strides = [1, 1]} : vector<1x40xf32> to vector<1x10xf32>
    %cst_107 = arith.constant 2.000000e+00 : f32
    %451 = vector.broadcast %cst_107 : f32 to vector<1x10xf32>
    %452 = arith.mulf %451, %450 : vector<1x10xf32>
    %cst_108 = arith.constant 1.000000e+00 : f32
    %453 = vector.broadcast %cst_108 : f32 to vector<1x10xf32>
    %454 = arith.subf %452, %453 : vector<1x10xf32>
    %455 = vector.extract_strided_slice %447 {offsets = [0, 30], sizes = [1, 10], strides = [1, 1]} : vector<1x40xf32> to vector<1x10xf32>
    %456 = arith.mulf %449, %395 : vector<1x10xf32>
    %457 = arith.mulf %448, %454 : vector<1x10xf32>
    %458 = arith.addf %456, %457 : vector<1x10xf32>
    %459 = math.tanh %458 : vector<1x10xf32>
    %460 = arith.mulf %455, %459 : vector<1x10xf32>
    %cst_109 = arith.constant dense<0.000000e+00> : vector<1x4xf32>
    %461 = tpu.matmul %460, %2, %cst_109 {dimension_numbers = #tpu.dot_dimension_numbers<[1], [0], [0], [1], [0, 0, 1, 1], [], []>} : vector<1x10xf32>, vector<10x4xf32>, vector<1x4xf32> -> vector<1x4xf32>
    %462 = arith.addf %461, %3 : vector<1x4xf32>
    %463 = vector.broadcast %416 : vector<4x1xf32> to vector<4x4xf32>
    %464 = arith.addf %463, %5 : vector<4x4xf32>
    %cst_110 = arith.constant dense<0xFF800000> : vector<4xf32>
    %465 = vector.multi_reduction <maximumf>, %464, %cst_110 [0] : vector<4x4xf32> to vector<4xf32>
    %466 = vector.shape_cast %465 : vector<4xf32> to vector<1x4xf32>
    %467 = vector.broadcast %466 : vector<1x4xf32> to vector<4x4xf32>
    %468 = arith.cmpf oge, %464, %467 : vector<4x4xf32>
    %c4_i32_111 = arith.constant 4 : i32
    %469 = vector.broadcast %c4_i32_111 : i32 to vector<4x4xi32>
    %470 = arith.select %468, %19, %469 : vector<4x4xi1>, vector<4x4xi32>
    %cst_112 = arith.constant dense<2147483647> : vector<4xi32>
    %471 = vector.multi_reduction <minsi>, %470, %cst_112 [0] : vector<4x4xi32> to vector<4xi32>
    %472 = vector.shape_cast %471 : vector<4xi32> to vector<1x4xi32>
    %473 = arith.addf %466, %462 : vector<1x4xf32>
    %474 = vector.shape_cast %473 : vector<1x4xf32> to vector<1x4xf32>
    %475 = vector.broadcast %474 : vector<1x4xf32> to vector<4x4xf32>
    %cst_113 = arith.constant 0.000000e+00 : f32
    %476 = vector.broadcast %cst_113 : f32 to vector<4x4xf32>
    %477 = arith.select %21, %475, %476 : vector<4x4xi1>, vector<4x4xf32>
    %cst_114 = arith.constant dense<0.000000e+00> : vector<4xf32>
    %478 = vector.multi_reduction <add>, %477, %cst_114 [1] : vector<4x4xf32> to vector<4xf32>
    %479 = vector.shape_cast %478 : vector<4xf32> to vector<4x1xf32>
    %480 = vector.extract_strided_slice %29 {offsets = [7, 0], sizes = [1, 40], strides = [1, 1]} : vector<8x40xf32> to vector<1x40xf32>
    %cst_115 = arith.constant dense<0.000000e+00> : vector<1x40xf32>
    %481 = tpu.matmul %438, %0, %cst_115 {dimension_numbers = #tpu.dot_dimension_numbers<[1], [0], [0], [1], [0, 0, 1, 1], [], []>} : vector<1x10xf32>, vector<10x40xf32>, vector<1x40xf32> -> vector<1x40xf32>
    %482 = arith.addf %480, %481 : vector<1x40xf32>
    %483 = arith.mulf %482, %17 : vector<1x40xf32>
    %484 = arith.negf %483 : vector<1x40xf32>
    %485 = math.exp %484 : vector<1x40xf32>
    %cst_116 = arith.constant 1.000000e+00 : f32
    %486 = vector.broadcast %cst_116 : f32 to vector<1x40xf32>
    %487 = arith.addf %486, %485 : vector<1x40xf32>
    %488 = arith.divf %486, %487 : vector<1x40xf32>
    %489 = vector.extract_strided_slice %488 {offsets = [0, 0], sizes = [1, 10], strides = [1, 1]} : vector<1x40xf32> to vector<1x10xf32>
    %490 = vector.extract_strided_slice %488 {offsets = [0, 10], sizes = [1, 10], strides = [1, 1]} : vector<1x40xf32> to vector<1x10xf32>
    %491 = vector.extract_strided_slice %488 {offsets = [0, 20], sizes = [1, 10], strides = [1, 1]} : vector<1x40xf32> to vector<1x10xf32>
    %cst_117 = arith.constant 2.000000e+00 : f32
    %492 = vector.broadcast %cst_117 : f32 to vector<1x10xf32>
    %493 = arith.mulf %492, %491 : vector<1x10xf32>
    %cst_118 = arith.constant 1.000000e+00 : f32
    %494 = vector.broadcast %cst_118 : f32 to vector<1x10xf32>
    %495 = arith.subf %493, %494 : vector<1x10xf32>
    %496 = vector.extract_strided_slice %488 {offsets = [0, 30], sizes = [1, 10], strides = [1, 1]} : vector<1x40xf32> to vector<1x10xf32>
    %497 = arith.mulf %490, %436 : vector<1x10xf32>
    %498 = arith.mulf %489, %495 : vector<1x10xf32>
    %499 = arith.addf %497, %498 : vector<1x10xf32>
    %500 = math.tanh %499 : vector<1x10xf32>
    %501 = arith.mulf %496, %500 : vector<1x10xf32>
    %502 = tpu.concatenate %501, %460 in 1 : vector<1x10xf32>, vector<1x10xf32> -> vector<1x20xf32>
    %cst_119 = arith.constant dense<0.000000e+00> : vector<1x40xf32>
    %503 = tpu.matmul %502, %1, %cst_119 {dimension_numbers = #tpu.dot_dimension_numbers<[1], [0], [0], [1], [0, 0, 1, 1], [], []>} : vector<1x20xf32>, vector<20x40xf32>, vector<1x40xf32> -> vector<1x40xf32>
    %504 = arith.addf %503, %8 : vector<1x40xf32>
    %505 = arith.mulf %504, %17 : vector<1x40xf32>
    %506 = arith.negf %505 : vector<1x40xf32>
    %507 = math.exp %506 : vector<1x40xf32>
    %cst_120 = arith.constant 1.000000e+00 : f32
    %508 = vector.broadcast %cst_120 : f32 to vector<1x40xf32>
    %509 = arith.addf %508, %507 : vector<1x40xf32>
    %510 = arith.divf %508, %509 : vector<1x40xf32>
    %511 = vector.extract_strided_slice %510 {offsets = [0, 0], sizes = [1, 10], strides = [1, 1]} : vector<1x40xf32> to vector<1x10xf32>
    %512 = vector.extract_strided_slice %510 {offsets = [0, 10], sizes = [1, 10], strides = [1, 1]} : vector<1x40xf32> to vector<1x10xf32>
    %513 = vector.extract_strided_slice %510 {offsets = [0, 20], sizes = [1, 10], strides = [1, 1]} : vector<1x40xf32> to vector<1x10xf32>
    %cst_121 = arith.constant 2.000000e+00 : f32
    %514 = vector.broadcast %cst_121 : f32 to vector<1x10xf32>
    %515 = arith.mulf %514, %513 : vector<1x10xf32>
    %cst_122 = arith.constant 1.000000e+00 : f32
    %516 = vector.broadcast %cst_122 : f32 to vector<1x10xf32>
    %517 = arith.subf %515, %516 : vector<1x10xf32>
    %518 = vector.extract_strided_slice %510 {offsets = [0, 30], sizes = [1, 10], strides = [1, 1]} : vector<1x40xf32> to vector<1x10xf32>
    %519 = arith.mulf %512, %458 : vector<1x10xf32>
    %520 = arith.mulf %511, %517 : vector<1x10xf32>
    %521 = arith.addf %519, %520 : vector<1x10xf32>
    %522 = math.tanh %521 : vector<1x10xf32>
    %523 = arith.mulf %518, %522 : vector<1x10xf32>
    %cst_123 = arith.constant dense<0.000000e+00> : vector<1x4xf32>
    %524 = tpu.matmul %523, %2, %cst_123 {dimension_numbers = #tpu.dot_dimension_numbers<[1], [0], [0], [1], [0, 0, 1, 1], [], []>} : vector<1x10xf32>, vector<10x4xf32>, vector<1x4xf32> -> vector<1x4xf32>
    %525 = arith.addf %524, %3 : vector<1x4xf32>
    %526 = vector.broadcast %479 : vector<4x1xf32> to vector<4x4xf32>
    %527 = arith.addf %526, %5 : vector<4x4xf32>
    %cst_124 = arith.constant dense<0xFF800000> : vector<4xf32>
    %528 = vector.multi_reduction <maximumf>, %527, %cst_124 [0] : vector<4x4xf32> to vector<4xf32>
    %529 = vector.shape_cast %528 : vector<4xf32> to vector<1x4xf32>
    %530 = vector.broadcast %529 : vector<1x4xf32> to vector<4x4xf32>
    %531 = arith.cmpf oge, %527, %530 : vector<4x4xf32>
    %c4_i32_125 = arith.constant 4 : i32
    %532 = vector.broadcast %c4_i32_125 : i32 to vector<4x4xi32>
    %533 = arith.select %531, %19, %532 : vector<4x4xi1>, vector<4x4xi32>
    %cst_126 = arith.constant dense<2147483647> : vector<4xi32>
    %534 = vector.multi_reduction <minsi>, %533, %cst_126 [0] : vector<4x4xi32> to vector<4xi32>
    %535 = vector.shape_cast %534 : vector<4xi32> to vector<1x4xi32>
    %536 = arith.addf %529, %525 : vector<1x4xf32>
    %537 = arith.addf %536, %4 : vector<1x4xf32>
    %cst_127 = arith.constant dense<0xFF800000> : vector<1xf32>
    %538 = vector.multi_reduction <maximumf>, %537, %cst_127 [1] : vector<1x4xf32> to vector<1xf32>
    %539 = vector.shape_cast %538 : vector<1xf32> to vector<1x1xf32>
    %540 = vector.broadcast %539 : vector<1x1xf32> to vector<1x4xf32>
    %541 = arith.cmpf oge, %537, %540 : vector<1x4xf32>
    %c4_i32_128 = arith.constant 4 : i32
    %542 = vector.broadcast %c4_i32_128 : i32 to vector<1x4xi32>
    %543 = arith.select %541, %18, %542 : vector<1x4xi1>, vector<1x4xi32>
    %cst_129 = arith.constant dense<2147483647> : vector<1xi32>
    %544 = vector.multi_reduction <minsi>, %543, %cst_129 [1] : vector<1x4xi32> to vector<1xi32>
    %545 = vector.shape_cast %544 : vector<1xi32> to vector<1x1xi32>
    %c7_i32 = arith.constant 7 : i32
    %546 = vector.broadcast %c7_i32 : i32 to vector<1x8xi32>
    %547 = arith.cmpi eq, %23, %546 : vector<1x8xi32>
    %c0_i32 = arith.constant 0 : i32
    %548 = vector.shape_cast %545 : vector<1x1xi32> to vector<1x1xi32>
    %549 = vector.broadcast %548 : vector<1x1xi32> to vector<1x8xi32>
    %550 = vector.broadcast %c0_i32 : i32 to vector<1x8xi32>
    %551 = arith.select %547, %549, %550 : vector<1x8xi1>, vector<1x8xi32>
    %552 = vector.broadcast %545 : vector<1x1xi32> to vector<1x4xi32>
    %553 = arith.cmpi eq, %18, %552 : vector<1x4xi32>
    %c0_i32_130 = arith.constant 0 : i32
    %554 = vector.broadcast %c0_i32_130 : i32 to vector<1x4xi32>
    %555 = arith.select %553, %535, %554 : vector<1x4xi1>, vector<1x4xi32>
    %cst_131 = arith.constant dense<0> : vector<1xi32>
    %556 = vector.multi_reduction <add>, %555, %cst_131 [1] : vector<1x4xi32> to vector<1xi32>
    %557 = vector.shape_cast %556 : vector<1xi32> to vector<1x1xi32>
    %c6_i32 = arith.constant 6 : i32
    %558 = vector.broadcast %c6_i32 : i32 to vector<1x8xi32>
    %559 = arith.cmpi eq, %23, %558 : vector<1x8xi32>
    %c0_i32_132 = arith.constant 0 : i32
    %560 = vector.shape_cast %557 : vector<1x1xi32> to vector<1x1xi32>
    %561 = vector.broadcast %560 : vector<1x1xi32> to vector<1x8xi32>
    %562 = vector.broadcast %c0_i32_132 : i32 to vector<1x8xi32>
    %563 = arith.select %559, %561, %562 : vector<1x8xi1>, vector<1x8xi32>
    %564 = arith.addi %551, %563 : vector<1x8xi32>
    %565 = vector.broadcast %557 : vector<1x1xi32> to vector<1x4xi32>
    %566 = arith.cmpi eq, %18, %565 : vector<1x4xi32>
    %c0_i32_133 = arith.constant 0 : i32
    %567 = vector.broadcast %c0_i32_133 : i32 to vector<1x4xi32>
    %568 = arith.select %566, %472, %567 : vector<1x4xi1>, vector<1x4xi32>
    %cst_134 = arith.constant dense<0> : vector<1xi32>
    %569 = vector.multi_reduction <add>, %568, %cst_134 [1] : vector<1x4xi32> to vector<1xi32>
    %570 = vector.shape_cast %569 : vector<1xi32> to vector<1x1xi32>
    %c5_i32 = arith.constant 5 : i32
    %571 = vector.broadcast %c5_i32 : i32 to vector<1x8xi32>
    %572 = arith.cmpi eq, %23, %571 : vector<1x8xi32>
    %c0_i32_135 = arith.constant 0 : i32
    %573 = vector.shape_cast %570 : vector<1x1xi32> to vector<1x1xi32>
    %574 = vector.broadcast %573 : vector<1x1xi32> to vector<1x8xi32>
    %575 = vector.broadcast %c0_i32_135 : i32 to vector<1x8xi32>
    %576 = arith.select %572, %574, %575 : vector<1x8xi1>, vector<1x8xi32>
    %577 = arith.addi %564, %576 : vector<1x8xi32>
    %578 = vector.broadcast %570 : vector<1x1xi32> to vector<1x4xi32>
    %579 = arith.cmpi eq, %18, %578 : vector<1x4xi32>
    %c0_i32_136 = arith.constant 0 : i32
    %580 = vector.broadcast %c0_i32_136 : i32 to vector<1x4xi32>
    %581 = arith.select %579, %409, %580 : vector<1x4xi1>, vector<1x4xi32>
    %cst_137 = arith.constant dense<0> : vector<1xi32>
    %582 = vector.multi_reduction <add>, %581, %cst_137 [1] : vector<1x4xi32> to vector<1xi32>
    %583 = vector.shape_cast %582 : vector<1xi32> to vector<1x1xi32>
    %c4_i32_138 = arith.constant 4 : i32
    %584 = vector.broadcast %c4_i32_138 : i32 to vector<1x8xi32>
    %585 = arith.cmpi eq, %23, %584 : vector<1x8xi32>
    %c0_i32_139 = arith.constant 0 : i32
    %586 = vector.shape_cast %583 : vector<1x1xi32> to vector<1x1xi32>
    %587 = vector.broadcast %586 : vector<1x1xi32> to vector<1x8xi32>
    %588 = vector.broadcast %c0_i32_139 : i32 to vector<1x8xi32>
    %589 = arith.select %585, %587, %588 : vector<1x8xi1>, vector<1x8xi32>
    %590 = arith.addi %577, %589 : vector<1x8xi32>
    %591 = vector.broadcast %583 : vector<1x1xi32> to vector<1x4xi32>
    %592 = arith.cmpi eq, %18, %591 : vector<1x4xi32>
    %c0_i32_140 = arith.constant 0 : i32
    %593 = vector.broadcast %c0_i32_140 : i32 to vector<1x4xi32>
    %594 = arith.select %592, %346, %593 : vector<1x4xi1>, vector<1x4xi32>
    %cst_141 = arith.constant dense<0> : vector<1xi32>
    %595 = vector.multi_reduction <add>, %594, %cst_141 [1] : vector<1x4xi32> to vector<1xi32>
    %596 = vector.shape_cast %595 : vector<1xi32> to vector<1x1xi32>
    %c3_i32 = arith.constant 3 : i32
    %597 = vector.broadcast %c3_i32 : i32 to vector<1x8xi32>
    %598 = arith.cmpi eq, %23, %597 : vector<1x8xi32>
    %c0_i32_142 = arith.constant 0 : i32
    %599 = vector.shape_cast %596 : vector<1x1xi32> to vector<1x1xi32>
    %600 = vector.broadcast %599 : vector<1x1xi32> to vector<1x8xi32>
    %601 = vector.broadcast %c0_i32_142 : i32 to vector<1x8xi32>
    %602 = arith.select %598, %600, %601 : vector<1x8xi1>, vector<1x8xi32>
    %603 = arith.addi %590, %602 : vector<1x8xi32>
    %604 = vector.broadcast %596 : vector<1x1xi32> to vector<1x4xi32>
    %605 = arith.cmpi eq, %18, %604 : vector<1x4xi32>
    %c0_i32_143 = arith.constant 0 : i32
    %606 = vector.broadcast %c0_i32_143 : i32 to vector<1x4xi32>
    %607 = arith.select %605, %283, %606 : vector<1x4xi1>, vector<1x4xi32>
    %cst_144 = arith.constant dense<0> : vector<1xi32>
    %608 = vector.multi_reduction <add>, %607, %cst_144 [1] : vector<1x4xi32> to vector<1xi32>
    %609 = vector.shape_cast %608 : vector<1xi32> to vector<1x1xi32>
    %c2_i32_145 = arith.constant 2 : i32
    %610 = vector.broadcast %c2_i32_145 : i32 to vector<1x8xi32>
    %611 = arith.cmpi eq, %23, %610 : vector<1x8xi32>
    %c0_i32_146 = arith.constant 0 : i32
    %612 = vector.shape_cast %609 : vector<1x1xi32> to vector<1x1xi32>
    %613 = vector.broadcast %612 : vector<1x1xi32> to vector<1x8xi32>
    %614 = vector.broadcast %c0_i32_146 : i32 to vector<1x8xi32>
    %615 = arith.select %611, %613, %614 : vector<1x8xi1>, vector<1x8xi32>
    %616 = arith.addi %603, %615 : vector<1x8xi32>
    %617 = vector.broadcast %609 : vector<1x1xi32> to vector<1x4xi32>
    %618 = arith.cmpi eq, %18, %617 : vector<1x4xi32>
    %c0_i32_147 = arith.constant 0 : i32
    %619 = vector.broadcast %c0_i32_147 : i32 to vector<1x4xi32>
    %620 = arith.select %618, %220, %619 : vector<1x4xi1>, vector<1x4xi32>
    %cst_148 = arith.constant dense<0> : vector<1xi32>
    %621 = vector.multi_reduction <add>, %620, %cst_148 [1] : vector<1x4xi32> to vector<1xi32>
    %622 = vector.shape_cast %621 : vector<1xi32> to vector<1x1xi32>
    %c1_i32 = arith.constant 1 : i32
    %623 = vector.broadcast %c1_i32 : i32 to vector<1x8xi32>
    %624 = arith.cmpi eq, %23, %623 : vector<1x8xi32>
    %c0_i32_149 = arith.constant 0 : i32
    %625 = vector.shape_cast %622 : vector<1x1xi32> to vector<1x1xi32>
    %626 = vector.broadcast %625 : vector<1x1xi32> to vector<1x8xi32>
    %627 = vector.broadcast %c0_i32_149 : i32 to vector<1x8xi32>
    %628 = arith.select %624, %626, %627 : vector<1x8xi1>, vector<1x8xi32>
    %629 = arith.addi %616, %628 : vector<1x8xi32>
    %630 = vector.broadcast %622 : vector<1x1xi32> to vector<1x4xi32>
    %631 = arith.cmpi eq, %18, %630 : vector<1x4xi32>
    %c0_i32_150 = arith.constant 0 : i32
    %632 = vector.broadcast %c0_i32_150 : i32 to vector<1x4xi32>
    %633 = arith.select %631, %157, %632 : vector<1x4xi1>, vector<1x4xi32>
    %cst_151 = arith.constant dense<0> : vector<1xi32>
    %634 = vector.multi_reduction <add>, %633, %cst_151 [1] : vector<1x4xi32> to vector<1xi32>
    %635 = vector.shape_cast %634 : vector<1xi32> to vector<1x1xi32>
    %c0_i32_152 = arith.constant 0 : i32
    %636 = vector.broadcast %c0_i32_152 : i32 to vector<1x8xi32>
    %637 = arith.cmpi eq, %23, %636 : vector<1x8xi32>
    %c0_i32_153 = arith.constant 0 : i32
    %638 = vector.shape_cast %635 : vector<1x1xi32> to vector<1x1xi32>
    %639 = vector.broadcast %638 : vector<1x1xi32> to vector<1x8xi32>
    %640 = vector.broadcast %c0_i32_153 : i32 to vector<1x8xi32>
    %641 = arith.select %637, %639, %640 : vector<1x8xi1>, vector<1x8xi32>
    %642 = arith.addi %629, %641 : vector<1x8xi32>
    %643 = tpu.concatenate %84, %147, %210, %273, %336, %399, %462, %525 in 0 : vector<1x4xf32>, vector<1x4xf32>, vector<1x4xf32>, vector<1x4xf32>, vector<1x4xf32>, vector<1x4xf32>, vector<1x4xf32>, vector<1x4xf32> -> vector<8x4xf32>
    %644 = tpu.concatenate %94, %157, %220, %283, %346, %409, %472, %535 in 0 : vector<1x4xi32>, vector<1x4xi32>, vector<1x4xi32>, vector<1x4xi32>, vector<1x4xi32>, vector<1x4xi32>, vector<1x4xi32>, vector<1x4xi32> -> vector<8x4xi32>
    %645 = arith.sitofp %644 : vector<8x4xi32> to vector<8x4xf32>
    %cst_154 = arith.constant 0.000000e+00 : f32
    %646 = vector.broadcast %cst_154 : f32 to vector<8x120xf32>
    %647 = tpu.concatenate %643, %645, %646 in 1 : vector<8x4xf32>, vector<8x4xf32>, vector<8x120xf32> -> vector<8x128xf32>
    %cst_155 = arith.constant 0.000000e+00 : f32
    %648 = vector.broadcast %cst_155 : f32 to vector<1x3xf32>
    %649 = arith.sitofp %642 : vector<1x8xi32> to vector<1x8xf32>
    %cst_156 = arith.constant 0.000000e+00 : f32
    %650 = vector.broadcast %cst_156 : f32 to vector<1x112xf32>
    %651 = tpu.concatenate %537, %539, %648, %649, %650 in 1 : vector<1x4xf32>, vector<1x1xf32>, vector<1x3xf32>, vector<1x8xf32>, vector<1x112xf32> -> vector<1x128xf32>
    %cst_157 = arith.constant 0.000000e+00 : f32
    %652 = vector.broadcast %cst_157 : f32 to vector<7x128xf32>
    %653 = tpu.concatenate %647, %651, %652 in 0 : vector<8x128xf32>, vector<1x128xf32>, vector<7x128xf32> -> vector<16x128xf32>
    %c0_158 = arith.constant 0 : index
    %c0_159 = arith.constant 0 : index
    %654 = vector.load %arg2[%c0_158, %c0_159] : memref<16x128xf32, #tpu.memory_space<vmem>>, vector<16x128xf32>
    tpu.vector_store %arg2[%c0_158, %c0_159], %653 {strides = array<i32>} : memref<16x128xf32, #tpu.memory_space<vmem>>, vector<16x128xf32>,
    return
  }
}

</mosaic_0001>

<bundles_post_ra>
// kernel: tpu_custom_call.1
= control target key start
LH: loop header
LB: loop body
LE: loop exit
PB: predicated region body
PF: predicated region fallthrough
CT: control target
= control target key end

     0   :  { %7 = vsyncpa [#allocation3], 0  ;;  %s4154_s0 = inlined_call_operand.vmem [shape: f32[8,1], index: 0, kind: input, shape index: {}]   ;;  %s4155_s1 = inlined_call_operand.hbm [shape: f32[64,128], index: 1, kind: input, shape index: {}]   ;;  %s4156_s2 = inlined_call_operand.hbm [shape: f32[16,128], index: 2, kind: output, shape index: {}]  }
   0x1   :  { %8 = vsyncpa [#allocation4], 0  ;;  %s3450_s9 = smov [#allocation2]   ;;  %s3402_s13 = scalar_lea.hbm %s4155_s1, 1024 }
   0x2   :  { %s16_s10 = sshll.u32 %s3450_s9, 4  ;;  %p3403_p0 = scmp.ne.s32.totalorder %s4155_s1, %s3402_s13  ;;  %s17_s10 = int_to_ptr.vmem [resolvable:$true] %s16_s10 }
   0x3   :  { %p3406_p1 = scmp.lt.u32.totalorder %s3402_s13, %s4155_s1 }
   0x5   :  { %p3408_p2 = pnand %p3406_p1, %p3403_p0 }
   0x7   :  { %3411 = shalt.err (!%p3408_p2)
}
   0x8   :  { %s3412_s18 = scalar_lea.vmem %s17_s10, 1024  ;;  %p3417_p4 = scmp.lt.s32.totalorder %s17_s10, %s17_s10 }
   0x9   :  { %p3413_p3 = scmp.ne.s32.totalorder %s17_s10, %s3412_s18  ;;  %p3418_p5 = scmp.lt.s32.totalorder %s3412_s18, %s3412_s18 }
   0xb   :  { %p3419_p6 = por %p3418_p5, %p3417_p4 }
   0xd   :  { %p3420_p7 = pnand %p3419_p6, %p3413_p3 }
   0xf   :  { %3423 = shalt.err (!%p3420_p7)
}
  0x10   :  { %s3451_s19 = smov 128   ;;  %s3452_s20 = smov 8  }
  0x11   :  { %22 = dma.hbm_to_vmem [thread:$0]  %s4155_s1, 1024, %s17_s10, [#allocation3], %s3451_s19, %s3451_s19, %s3452_s20  }
  0x12   :  { %3446 = dma.done.wait [#allocation3], 1024  }
  0x13   :  { %3447 = vsyncadd [#allocation3], 4294966272  ;;  %v3453_v0 = vmov 0.0|0.0   ;;  %vm3454_vm0 = vmmov 0   ;;  %v3455_v1 = vmov 0.0   ;;  %v3456_v2 = vmov 0  }
  0x14   :  { %3199 = vmatprep.subr.bf16.mxu0 %v3453_v0  ;;  %3203 = vmatprep.subr.bf16.mxu1 %v3453_v0  ;;  %vm70_vm1 = vcmask 1041408   ;;  %vm3457_vm2 = vmmov 1   ;;  %v26_v4 = vld [vmem:[#allocation2] sm:$0xff]  ;;  %v27_v5 = vld [vmem:[#allocation2 + $0x8] sm:$0x3]  ;;  %v39_v8 = vlaneseq  ;;  %v3458_v15 = vmov 1.0  }
  0x15   :  { %3019 = vmatprep.mubr.msk.f32.mxu0 %vm3454_vm0, %v3455_v1  ;;  %3303 = vset.pattern.permute.xlu0 %v3456_v2  ;;  %vm3503_vm3 = vmpackc.low %vm70_vm1, %vm3457_vm2  ;;  %v48_v6 = vld [vmem:[%s4154_s0] sm:$0xff]  ;;  %v3510_v7 = vpack.c.bf16 %v27_v5, %v26_v4  ;;  %v2854_v10 = vld [vmem:[#allocation2 + $0x38] ss:$0 sm:$0xff]  ;;  %s3459_s0 = smov 108   ;;  %s3460_s24 = smov 10   ;;  %vm180_vm7 = vcmask 1043456  }
  0x16   :  { %3028 = vmatprep.mubr.msk.f32.mxu1 %vm3454_vm0, %v3455_v1  ;;  %51 = vperm.xlu0 %3303, %v48_v6   ;;  %v3520_v11 = vand.u32 127, %v39_v8  ;;  %v2855_v13 = vld [vmem:[#allocation2 + $0x39] ss:$0 sm:$0xff]  ;;  %v28_v32 = vld [vmem:[#allocation2 + $0x10] sm:$0xff]  ;;  %v3539_v35 = vld [vmem:[#allocation2 + $0x20] sm:$0xf] }
  0x17   :  { %3202 = vmatpush3.bf16.msk.msra.mxu0 %vm3503_vm3, %v3510_v7  ;;  %v29_v33 = vld [vmem:[#allocation2 + $0x18] sm:$0xff]  ;;  %s3461_s25 = smov 20   ;;  %s3462_s26 = smov 98   ;;  %vm66_vm8 = vcmask 80896   ;;  %vm176_vm9 = vcmask 162816   ;;  %vm359_vm11 = vcmask 27648  }
  0x18   :  { %3206 = vmatprep.subr.bf16.mxu0 %v3453_v0  ;;  %vm41_vm4 = vcmp.ge.s32.totalorder %v3520_v11, 20  ;;  %vm42_vm5 = vcmp.lt.s32.totalorder %v3520_v11, 30  ;;  %v3535_v34 = vpack.c.bf16 %v29_v33, %v28_v32  ;;  %v3557_v41 = vld [vmem:[#allocation2 + $0x3a] sm:$0x1]  ;;  %s3464_s27 = smov 4   ;;  %s3465_s28 = smov [#allocation5]  }
  0x19   :  { %vm43_vm6 = vmand %vm41_vm4, %vm42_vm5  ;;  %s2842_s29 = sshll.u32 %s3465_s28, 4  ;;  %s2843_s29 = int_to_ptr.vmem [resolvable:$true] %s2842_s29 }
  0x1a   :  { %3020 = vmatmul.mubr.f32.vlgmr.msra.gmra.mrb[0].mxu0 %v3455_v1  ;;  %v3526_v16 = vsel %vm43_vm6, 2.0, %v3458_v15  ;;  %3205 = vmatpush3.bf16.msra.mxu1 %v3535_v34  ;;  %vm2795_vm6 = vcmask 1040384   ;;  %s3424_s30 = scalar_lea.vmem %s2843_s29, 256  ;;  %p3429_p9 = scmp.lt.s32.totalorder %s2843_s29, %s2843_s29 }
  0x1b   :  { %3035 = vmatprep.mubr.msk.f32.mxu0 %vm3454_vm0, %v3455_v1  ;;  %3026 = vmatprep.subr.mxu1 %v3455_v1  ;;  %p3425_p8 = scmp.ne.s32.totalorder %s2843_s29, %s3424_s30  ;;  %p3430_p10 = scmp.lt.s32.totalorder %s3424_s30, %s3424_s30 }
  0x1d   :  { %p3431_p11 = por %p3430_p10, %p3429_p9 }
  0x1e   :  { %3027 = vmatpush3.msk.msra.mxu1 %vm180_vm7, %v3539_v35 }
  0x1f   :  { %3210 = vmatprep.subr.bf16.mxu1 %v3453_v0  ;;  %p3432_p12 = pnand %p3431_p11, %p3425_p8 }
  0x95   :  { %v52_v9 = vpop.permute.xlu0 %51 }
  0x96   :  { %v58_v12 = vmul.f32 %v2854_v10, %v52_v9 }
  0x98   :  { %v3524_v14 = vadd.f32 %v2855_v13, %v58_v12 }
  0xed   :  { %v140_v17 = vpop.f32.mrb[0].mxu0 }
  0xee   :  { %v144_v18 = vadd.f32 %v140_v17, %v3524_v14  ;;  %v3021_v19 = vpop.f32.mrb[1].mxu0 }
  0xef   :  { %v31_v19 = vld [vmem:[#allocation2 + $0x28] sm:$0xff] }
  0xf0   :  { %v145_v20 = vmul.f32 %v144_v18, %v3526_v16 }
  0xf2   :  { %v2857_v21 = vmul.f32 -1.442695, %v145_v20  ;;  %v32_v20 = vld [vmem:[#allocation2 + $0x30] sm:$0x3] }
  0xf4   :  { %3304 = vpow2.f32 %v2857_v21  ;;  %v3575_v21 = vpack.c.bf16 %v32_v20, %v31_v19 }
  0xf6   :  { %3209 = vmatpush3.bf16.msk.msra.mxu0 %vm3503_vm3, %v3575_v21 }
  0xf7   :  { %3214 = vmatprep.subr.bf16.mxu0 %v3453_v0 }
  0xfe   :  { %v3305_v22 = vpop.eup %3304 }
  0xff   :  { %v149_v23 = vadd.f32 1.0, %v3305_v22 }
 0x101   :  { %3306 = vrcp.f32 %v149_v23 }
 0x10b   :  { %v3307_v24 = vpop.eup %3306 }
 0x10c   :  { %v152_v25 = vmul.f32 2.0, %v3307_v24  ;;  %v154_v29 = vmul.f32 0.0, %v3307_v24 }
 0x10e   :  { %v2858_v26 = vadd.f32 -1.0, %v152_v25 }
 0x110   :  { %156 = vrot.lane.b32.xlu0 %v2858_v26, %s3459_s0 }
 0x182   :  { %v157_v27 = vpop.permute.xlu0 %156 }
 0x183   :  { %v159_v28 = vmul.f32 %v3307_v24, %v157_v27 }
 0x185   :  { %161 = vrot.lane.b32.xlu1 %v159_v28, %s3460_s24 }
 0x1f7   :  { %v162_v30 = vpop.permute.xlu1 %161 }
 0x1f8   :  { %v3532_v31 = vadd.f32 %v162_v30, %v154_v29 }
 0x1fa   :  { %3308 = vtanh.f32 %v3532_v31  ;;  %v474_v12 = vrot.slane %v3532_v31, 7 }
 0x204   :  { %v3309_v36 = vpop.eup %3308 }
 0x205   :  { %167 = vrot.lane.b32.xlu1 %v3309_v36, %s3461_s25 }
 0x277   :  { %v168_v37 = vpop.permute.xlu1 %167 }
 0x278   :  { %v170_v38 = vmul.f32 %v3307_v24, %v168_v37 }
 0x27a   :  { %172 = vrot.lane.b32.xlu0 %v170_v38, %s3462_s26 }
 0x2ec   :  { %v173_v39 = vpop.permute.xlu0 %172 }
 0x2ed   :  { %v175_v40 = vsel %vm66_vm8, %v173_v39, 0.0 }
 0x2ee   :  { %3029 = vmatmul.mubr.msk.f32.vlgmr.msra.gmra.mrb[0].mxu1 %vm176_vm9, %v175_v40 }
 0x2ef   :  { %3213 = vmatpush3.bf16.msk.msra.mxu1 %vm3503_vm3, %v3510_v7  ;;  %3042 = vmatprep.mubr.msk.f32.mxu1 %vm3454_vm0, %v3455_v1 }
 0x2f0   :  { %3217 = vmatprep.subr.bf16.mxu1 %v3453_v0 }
 0x2f2   :  { %3043 = vmatmul.mubr.msk.f32.vlgmr.msra.gmra.mrb[2].mxu1 %vm66_vm8, %v173_v39 }
 0x2f3   :  { %3058 = vmatprep.mubr.msk.f32.mxu1 %vm3454_vm0, %v3455_v1  ;;  %3220 = vmatpush3.bf16.msk.msra.mxu1 %vm3503_vm3, %v3575_v21 }
 0x2f4   :  { %3225 = vmatprep.subr.bf16.mxu1 %v3453_v0 }
 0x3c1   :  { %v250_v42 = vpop.f32.mrb[0].mxu1 }
 0x3c2   :  { %v251_v43 = vadd.f32 %v250_v42, %v3557_v41  ;;  %v3030_v44 = vpop.f32.mrb[1].mxu1 }
 0x3c4   :  { %v254_v45 = vmul.f32 %v251_v43, %v3526_v16 }
 0x3c5   :  { %v456_v46 = vpop.f32.mrb[2].mxu1 }
 0x3c6   :  { %v2861_v47 = vmul.f32 -1.442695, %v254_v45  ;;  %v461_v48 = vrot.slane %v456_v46, 7  ;;  %v3044_v49 = vpop.f32.mrb[3].mxu1 }
 0x3c8   :  { %3310 = vpow2.f32 %v2861_v47  ;;  %v463_v50 = vadd.f32 %v461_v48, %v3524_v14 }
 0x3ca   :  { %v464_v51 = vmul.f32 %v463_v50, %v3526_v16 }
 0x3cc   :  { %v2867_v52 = vmul.f32 -1.442695, %v464_v51 }
 0x3ce   :  { %3312 = vpow2.f32 %v2867_v52 }
 0x3d2   :  { %v3311_v53 = vpop.eup %3310 }
 0x3d3   :  { %v258_v54 = vadd.f32 1.0, %v3311_v53 }
 0x3d5   :  { %3314 = vrcp.f32 %v258_v54 }
 0x3d8   :  { %v3313_v55 = vpop.eup %3312 }
 0x3d9   :  { %v468_v56 = vadd.f32 1.0, %v3313_v55 }
 0x3db   :  { %3316 = vrcp.f32 %v468_v56 }
 0x3df   :  { %v3315_v57 = vpop.eup %3314 }
 0x3e0   :  { %v261_v58 = vmul.f32 2.0, %v3315_v57  ;;  %v263_v6 = vmul.f32 0.0, %v3315_v57 }
 0x3e2   :  { %v2862_v59 = vadd.f32 -1.0, %v261_v58 }
 0x3e4   :  { %265 = vrot.lane.b32.xlu1 %v2862_v59, %s3459_s0 }
 0x3e5   :  { %v3317_v60 = vpop.eup %3316 }
 0x3e6   :  { %v471_v61 = vmul.f32 2.0, %v3317_v60  ;;  %v476_v13 = vmul.f32 %v3317_v60, %v474_v12 }
 0x3e8   :  { %v2868_v62 = vadd.f32 -1.0, %v471_v61 }
 0x3ea   :  { %478 = vrot.lane.b32.xlu0 %v2868_v62, %s3459_s0 }
 0x456   :  { %v266_v63 = vpop.permute.xlu1 %265 }
 0x457   :  { %v268_v2 = vmul.f32 %v3315_v57, %v266_v63 }
 0x459   :  { %270 = vrot.lane.b32.xlu1 %v268_v2, %s3460_s24 }
 0x45c   :  { %v479_v4 = vpop.permute.xlu0 %478 }
 0x45d   :  { %v481_v5 = vmul.f32 %v3317_v60, %v479_v4 }
 0x45f   :  { %483 = vrot.lane.b32.xlu0 %v481_v5, %s3460_s24 }
 0x4cb   :  { %v271_v9 = vpop.permute.xlu1 %270 }
 0x4cc   :  { %v3567_v10 = vadd.f32 %v271_v9, %v263_v6 }
 0x4ce   :  { %3318 = vtanh.f32 %v3567_v10 }
 0x4d1   :  { %v484_v15 = vpop.permute.xlu0 %483 }
 0x4d2   :  { %v3571_v17 = vadd.f32 %v484_v15, %v476_v13 }
 0x4d4   :  { %3320 = vtanh.f32 %v3571_v17  ;;  %v795_v9 = vrot.slane %v3571_v17, 7 }
 0x4d8   :  { %v3319_v18 = vpop.eup %3318 }
 0x4d9   :  { %276 = vrot.lane.b32.xlu1 %v3319_v18, %s3461_s25 }
 0x4de   :  { %v3321_v22 = vpop.eup %3320 }
 0x4df   :  { %489 = vrot.lane.b32.xlu0 %v3321_v22, %s3461_s25 }
 0x54b   :  { %v277_v23 = vpop.permute.xlu1 %276 }
 0x54c   :  { %v279_v24 = vmul.f32 %v3315_v57, %v277_v23 }
 0x54e   :  { %281 = vrot.lane.b32.xlu1 %v279_v24, %s3462_s26  ;;  %v497_v25 = vrot.slane %v279_v24, 7 }
 0x551   :  { %v490_v26 = vpop.permute.xlu0 %489 }
 0x552   :  { %v492_v27 = vmul.f32 %v3317_v60, %v490_v26  ;;  %498 = vrot.lane.b32.xlu1 %v497_v25, %s3459_s0 }
 0x554   :  { %494 = vrot.lane.b32.xlu0 %v492_v27, %s3462_s26  ;;  %v706_v28 = vrot.slane %v492_v27, 1 }
 0x558   :  { %707 = vrot.lane.b32.xlu0 %v706_v28, %s3462_s26 }
 0x5c0   :  { %v282_v29 = vpop.permute.xlu1 %281 }
 0x5c1   :  { %3036 = vmatmul.mubr.msk.f32.vlgmr.msra.gmra.mrb[2].mxu0 %vm66_vm8, %v282_v29 }
 0x5c2   :  { %3216 = vmatpush3.bf16.msra.mxu0 %v3535_v34  ;;  %3051 = vmatprep.mubr.msk.f32.mxu0 %vm3454_vm0, %v3455_v1 }
 0x5c3   :  { %3049 = vmatprep.subr.mxu0 %v3455_v1 }
 0x5c4   :  { %v499_v30 = vpop.permute.xlu1 %498 }
 0x5c6   :  { %v495_v31 = vpop.permute.xlu0 %494  ;;  %3050 = vmatpush3.msk.msra.mxu0 %vm180_vm7, %v3539_v35 }
 0x5c7   :  { %v501_v32 = vsel %vm66_vm8, %v495_v31, %v499_v30  ;;  %3221 = vmatprep.subr.bf16.mxu0 %v3453_v0 }
 0x5c8   :  { %v503_v33 = vrot.slane %v501_v32, 1 }
 0x5ca   :  { %3052 = vmatmul.mubr.msk.f32.vlgmr.msra.gmra.mrb[4].mxu0 %vm176_vm9, %v503_v33  ;;  %v708_v36 = vpop.permute.xlu0 %707 }
 0x5cb   :  { %3224 = vmatpush3.bf16.msk.msra.mxu0 %vm3503_vm3, %v3510_v7  ;;  %3065 = vmatprep.mubr.msk.f32.mxu0 %vm3454_vm0, %v3455_v1 }
 0x5cc   :  { %3228 = vmatprep.subr.bf16.mxu0 %v3453_v0 }
 0x5ce   :  { %3066 = vmatmul.mubr.msk.f32.vlgmr.msra.gmra.mrb[6].mxu0 %vm66_vm8, %v708_v36 }
 0x5cf   :  { %3231 = vmatpush3.bf16.msk.msra.mxu0 %vm3503_vm3, %v3575_v21  ;;  %3081 = vmatprep.mubr.msk.f32.mxu0 %vm3454_vm0, %v3455_v1 }
 0x5d0   :  { %3236 = vmatprep.subr.bf16.mxu0 %v3453_v0 }
 0x694   :  { %v3613_v37 = vpop.f32.mrb[2].mxu0 }
 0x695   :  { %v3037_v38 = vpop.f32.mrb[3].mxu0 }
 0x69d   :  { %v572_v39 = vpop.f32.mrb[4].mxu0 }
 0x69e   :  { %v573_v40 = vadd.f32 %v572_v39, %v3557_v41  ;;  %v3053_v42 = vpop.f32.mrb[5].mxu0 }
 0x6a0   :  { %v576_v43 = vmul.f32 %v573_v40, %v3526_v16 }
 0x6a1   :  { %v777_v44 = vpop.f32.mrb[6].mxu0 }
 0x6a2   :  { %v2871_v45 = vmul.f32 -1.442695, %v576_v43  ;;  %v782_v46 = vrot.slane %v777_v44, 6  ;;  %v3067_v47 = vpop.f32.mrb[7].mxu0 }
 0x6a4   :  { %3322 = vpow2.f32 %v2871_v45  ;;  %v784_v48 = vadd.f32 %v782_v46, %v3524_v14 }
 0x6a6   :  { %v785_v49 = vmul.f32 %v784_v48, %v3526_v16 }
 0x6a8   :  { %v2877_v50 = vmul.f32 -1.442695, %v785_v49 }
 0x6aa   :  { %3324 = vpow2.f32 %v2877_v50 }
 0x6ae   :  { %v3323_v51 = vpop.eup %3322 }
 0x6af   :  { %v580_v52 = vadd.f32 1.0, %v3323_v51 }
 0x6b1   :  { %3326 = vrcp.f32 %v580_v52 }
 0x6b4   :  { %v3325_v53 = vpop.eup %3324 }
 0x6b5   :  { %v789_v54 = vadd.f32 1.0, %v3325_v53 }
 0x6b7   :  { %3328 = vrcp.f32 %v789_v54 }
 0x6bb   :  { %v3327_v55 = vpop.eup %3326 }
 0x6bc   :  { %v583_v56 = vmul.f32 2.0, %v3327_v55  ;;  %v585_v4 = vmul.f32 %v3327_v55, %v3567_v10 }
 0x6be   :  { %v2872_v57 = vadd.f32 -1.0, %v583_v56 }
 0x6c0   :  { %587 = vrot.lane.b32.xlu1 %v2872_v57, %s3459_s0 }
 0x6c1   :  { %v3329_v58 = vpop.eup %3328 }
 0x6c2   :  { %v792_v59 = vmul.f32 2.0, %v3329_v58  ;;  %v797_v12 = vmul.f32 %v3329_v58, %v795_v9 }
 0x6c4   :  { %v2878_v60 = vadd.f32 -1.0, %v792_v59 }
 0x6c6   :  { %799 = vrot.lane.b32.xlu0 %v2878_v60, %s3459_s0 }
 0x732   :  { %v588_v61 = vpop.permute.xlu1 %587 }
 0x733   :  { %v590_v62 = vmul.f32 %v3327_v55, %v588_v61 }
 0x735   :  { %592 = vrot.lane.b32.xlu1 %v590_v62, %s3460_s24 }
 0x738   :  { %v800_v63 = vpop.permute.xlu0 %799 }
 0x739   :  { %v802_v2 = vmul.f32 %v3329_v58, %v800_v63 }
 0x73b   :  { %804 = vrot.lane.b32.xlu0 %v802_v2, %s3460_s24 }
 0x7a7   :  { %v593_v5 = vpop.permute.xlu1 %592 }
 0x7a8   :  { %v3624_v6 = vadd.f32 %v593_v5, %v585_v4 }
 0x7aa   :  { %3330 = vtanh.f32 %v3624_v6 }
 0x7ad   :  { %v805_v13 = vpop.permute.xlu0 %804 }
 0x7ae   :  { %v3628_v15 = vadd.f32 %v805_v13, %v797_v12 }
 0x7b0   :  { %3332 = vtanh.f32 %v3628_v15  ;;  %v1116_v4 = vrot.slane %v3628_v15, 7 }
 0x7b4   :  { %v3331_v18 = vpop.eup %3330 }
 0x7b5   :  { %598 = vrot.lane.b32.xlu1 %v3331_v18, %s3461_s25 }
 0x7ba   :  { %v3333_v19 = vpop.eup %3332 }
 0x7bb   :  { %810 = vrot.lane.b32.xlu0 %v3333_v19, %s3461_s25 }
 0x827   :  { %v599_v10 = vpop.permute.xlu1 %598 }
 0x828   :  { %v601_v20 = vmul.f32 %v3327_v55, %v599_v10 }
 0x82a   :  { %603 = vrot.lane.b32.xlu1 %v601_v20, %s3462_s26  ;;  %v818_v22 = vrot.slane %v601_v20, 6 }
 0x82d   :  { %v811_v17 = vpop.permute.xlu0 %810 }
 0x82e   :  { %v813_v23 = vmul.f32 %v3329_v58, %v811_v17  ;;  %819 = vrot.lane.b32.xlu1 %v818_v22, %s3459_s0 }
 0x830   :  { %815 = vrot.lane.b32.xlu0 %v813_v23, %s3462_s26  ;;  %v1027_v24 = vrot.slane %v813_v23, 2 }
 0x834   :  { %1028 = vrot.lane.b32.xlu0 %v1027_v24, %s3462_s26 }
 0x89c   :  { %v604_v25 = vpop.permute.xlu1 %603 }
 0x89d   :  { %3059 = vmatmul.mubr.msk.f32.vlgmr.msra.gmra.mrb[4].mxu1 %vm66_vm8, %v604_v25 }
 0x89e   :  { %3227 = vmatpush3.bf16.msra.mxu1 %v3535_v34  ;;  %3074 = vmatprep.mubr.msk.f32.mxu1 %vm3454_vm0, %v3455_v1 }
 0x89f   :  { %3072 = vmatprep.subr.mxu1 %v3455_v1 }
 0x8a0   :  { %v820_v26 = vpop.permute.xlu1 %819 }
 0x8a2   :  { %v816_v27 = vpop.permute.xlu0 %815  ;;  %3073 = vmatpush3.msk.msra.mxu1 %vm180_vm7, %v3539_v35 }
 0x8a3   :  { %v822_v28 = vsel %vm66_vm8, %v816_v27, %v820_v26  ;;  %3232 = vmatprep.subr.bf16.mxu1 %v3453_v0 }
 0x8a4   :  { %v824_v29 = vrot.slane %v822_v28, 2 }
 0x8a6   :  { %3075 = vmatmul.mubr.msk.f32.vlgmr.msra.gmra.mrb[6].mxu1 %vm176_vm9, %v824_v29  ;;  %v1029_v30 = vpop.permute.xlu0 %1028 }
 0x8a7   :  { %3235 = vmatpush3.bf16.msk.msra.mxu1 %vm3503_vm3, %v3510_v7  ;;  %3088 = vmatprep.mubr.msk.f32.mxu1 %vm3454_vm0, %v3455_v1 }
 0x8a8   :  { %3239 = vmatprep.subr.bf16.mxu1 %v3453_v0 }
 0x8aa   :  { %3089 = vmatmul.mubr.msk.f32.vlgmr.msra.gmra.mrb[8].mxu1 %vm66_vm8, %v1029_v30 }
 0x8ab   :  { %3242 = vmatpush3.bf16.msk.msra.mxu1 %vm3503_vm3, %v3575_v21  ;;  %3104 = vmatprep.mubr.msk.f32.mxu1 %vm3454_vm0, %v3455_v1 }
 0x8ac   :  { %3247 = vmatprep.subr.bf16.mxu1 %v3453_v0 }
 0x970   :  { %v3660_v31 = vpop.f32.mrb[4].mxu1 }
 0x971   :  { %v3060_v32 = vpop.f32.mrb[5].mxu1 }
 0x979   :  { %v893_v33 = vpop.f32.mrb[6].mxu1 }
 0x97a   :  { %v894_v36 = vadd.f32 %v893_v33, %v3557_v41  ;;  %v3076_v38 = vpop.f32.mrb[7].mxu1 }
 0x97c   :  { %v897_v39 = vmul.f32 %v894_v36, %v3526_v16 }
 0x97d   :  { %v1098_v40 = vpop.f32.mrb[8].mxu1 }
 0x97e   :  { %v2881_v42 = vmul.f32 -1.442695, %v897_v39  ;;  %v1103_v43 = vrot.slane %v1098_v40, 5  ;;  %v3090_v44 = vpop.f32.mrb[9].mxu1 }
 0x980   :  { %3334 = vpow2.f32 %v2881_v42  ;;  %v1105_v45 = vadd.f32 %v1103_v43, %v3524_v14 }
 0x982   :  { %v1106_v46 = vmul.f32 %v1105_v45, %v3526_v16 }
 0x984   :  { %v2887_v47 = vmul.f32 -1.442695, %v1106_v46 }
 0x986   :  { %3336 = vpow2.f32 %v2887_v47 }
 0x98a   :  { %v3335_v48 = vpop.eup %3334 }
 0x98b   :  { %v901_v49 = vadd.f32 1.0, %v3335_v48 }
 0x98d   :  { %3338 = vrcp.f32 %v901_v49 }
 0x990   :  { %v3337_v50 = vpop.eup %3336 }
 0x991   :  { %v1110_v51 = vadd.f32 1.0, %v3337_v50 }
 0x993   :  { %3340 = vrcp.f32 %v1110_v51 }
 0x997   :  { %v3339_v52 = vpop.eup %3338 }
 0x998   :  { %v904_v53 = vmul.f32 2.0, %v3339_v52  ;;  %v906_v62 = vmul.f32 %v3339_v52, %v3624_v6 }
 0x99a   :  { %v2882_v54 = vadd.f32 -1.0, %v904_v53 }
 0x99c   :  { %908 = vrot.lane.b32.xlu1 %v2882_v54, %s3459_s0 }
 0x99d   :  { %v3341_v55 = vpop.eup %3340 }
 0x99e   :  { %v1113_v56 = vmul.f32 2.0, %v3341_v55  ;;  %v1118_v5 = vmul.f32 %v3341_v55, %v1116_v4 }
 0x9a0   :  { %v2888_v57 = vadd.f32 -1.0, %v1113_v56 }
 0x9a2   :  { %1120 = vrot.lane.b32.xlu0 %v2888_v57, %s3459_s0 }
 0xa0e   :  { %v909_v58 = vpop.permute.xlu1 %908 }
 0xa0f   :  { %v911_v59 = vmul.f32 %v3339_v52, %v909_v58 }
 0xa11   :  { %913 = vrot.lane.b32.xlu1 %v911_v59, %s3460_s24 }
 0xa14   :  { %v1121_v60 = vpop.permute.xlu0 %1120 }
 0xa15   :  { %v1123_v61 = vmul.f32 %v3341_v55, %v1121_v60 }
 0xa17   :  { %1125 = vrot.lane.b32.xlu0 %v1123_v61, %s3460_s24 }
 0xa83   :  { %v914_v63 = vpop.permute.xlu1 %913 }
 0xa84   :  { %v3671_v2 = vadd.f32 %v914_v63, %v906_v62 }
 0xa86   :  { %3342 = vtanh.f32 %v3671_v2 }
 0xa89   :  { %v1126_v9 = vpop.permute.xlu0 %1125 }
 0xa8a   :  { %v3675_v12 = vadd.f32 %v1126_v9, %v1118_v5 }
 0xa8c   :  { %3344 = vtanh.f32 %v3675_v12  ;;  %v1437_v63 = vrot.slane %v3675_v12, 7 }
 0xa90   :  { %v3343_v13 = vpop.eup %3342 }
 0xa91   :  { %919 = vrot.lane.b32.xlu1 %v3343_v13, %s3461_s25 }
 0xa96   :  { %v3345_v18 = vpop.eup %3344 }
 0xa97   :  { %1131 = vrot.lane.b32.xlu0 %v3345_v18, %s3461_s25 }
 0xb03   :  { %v920_v6 = vpop.permute.xlu1 %919 }
 0xb04   :  { %v922_v19 = vmul.f32 %v3339_v52, %v920_v6 }
 0xb06   :  { %924 = vrot.lane.b32.xlu1 %v922_v19, %s3462_s26  ;;  %v1139_v10 = vrot.slane %v922_v19, 5 }
 0xb09   :  { %v1132_v15 = vpop.permute.xlu0 %1131 }
 0xb0a   :  { %v1134_v20 = vmul.f32 %v3341_v55, %v1132_v15  ;;  %1140 = vrot.lane.b32.xlu1 %v1139_v10, %s3459_s0 }
 0xb0c   :  { %1136 = vrot.lane.b32.xlu0 %v1134_v20, %s3462_s26  ;;  %v1348_v22 = vrot.slane %v1134_v20, 3 }
 0xb10   :  { %1349 = vrot.lane.b32.xlu0 %v1348_v22, %s3462_s26 }
 0xb78   :  { %v925_v17 = vpop.permute.xlu1 %924 }
 0xb79   :  { %3082 = vmatmul.mubr.msk.f32.vlgmr.msra.gmra.mrb[8].mxu0 %vm66_vm8, %v925_v17 }
 0xb7a   :  { %3238 = vmatpush3.bf16.msra.mxu0 %v3535_v34  ;;  %3097 = vmatprep.mubr.msk.f32.mxu0 %vm3454_vm0, %v3455_v1 }
 0xb7b   :  { %3095 = vmatprep.subr.mxu0 %v3455_v1 }
 0xb7c   :  { %v1141_v23 = vpop.permute.xlu1 %1140 }
 0xb7e   :  { %v1137_v24 = vpop.permute.xlu0 %1136  ;;  %3096 = vmatpush3.msk.msra.mxu0 %vm180_vm7, %v3539_v35 }
 0xb7f   :  { %v1143_v25 = vsel %vm66_vm8, %v1137_v24, %v1141_v23  ;;  %3243 = vmatprep.subr.bf16.mxu0 %v3453_v0 }
 0xb80   :  { %v1145_v26 = vrot.slane %v1143_v25, 3 }
 0xb82   :  { %3098 = vmatmul.mubr.msk.f32.vlgmr.msra.gmra.mrb[10].mxu0 %vm176_vm9, %v1145_v26  ;;  %v1350_v27 = vpop.permute.xlu0 %1349 }
 0xb83   :  { %3246 = vmatpush3.bf16.msk.msra.mxu0 %vm3503_vm3, %v3510_v7  ;;  %3111 = vmatprep.mubr.msk.f32.mxu0 %vm3454_vm0, %v3455_v1 }
 0xb84   :  { %3250 = vmatprep.subr.bf16.mxu0 %v3453_v0 }
 0xb86   :  { %3112 = vmatmul.mubr.msk.f32.vlgmr.msra.gmra.mrb[12].mxu0 %vm66_vm8, %v1350_v27 }
 0xb87   :  { %3253 = vmatpush3.bf16.msk.msra.mxu0 %vm3503_vm3, %v3575_v21  ;;  %3127 = vmatprep.mubr.msk.f32.mxu0 %vm3454_vm0, %v3455_v1 }
 0xb88   :  { %3258 = vmatprep.subr.bf16.mxu0 %v3453_v0 }
 0xc4c   :  { %v3707_v28 = vpop.f32.mrb[8].mxu0 }
 0xc4d   :  { %v3083_v29 = vpop.f32.mrb[9].mxu0 }
 0xc55   :  { %v1214_v30 = vpop.f32.mrb[10].mxu0 }
 0xc56   :  { %v1215_v32 = vadd.f32 %v1214_v30, %v3557_v41  ;;  %v3099_v33 = vpop.f32.mrb[11].mxu0 }
 0xc58   :  { %v1218_v36 = vmul.f32 %v1215_v32, %v3526_v16 }
 0xc59   :  { %v1419_v38 = vpop.f32.mrb[12].mxu0 }
 0xc5a   :  { %v2891_v39 = vmul.f32 -1.442695, %v1218_v36  ;;  %v1424_v40 = vrot.slane %v1419_v38, 4  ;;  %v3113_v42 = vpop.f32.mrb[13].mxu0 }
 0xc5c   :  { %3346 = vpow2.f32 %v2891_v39  ;;  %v1426_v43 = vadd.f32 %v1424_v40, %v3524_v14 }
 0xc5e   :  { %v1427_v44 = vmul.f32 %v1426_v43, %v3526_v16 }
 0xc60   :  { %v2897_v45 = vmul.f32 -1.442695, %v1427_v44 }
 0xc62   :  { %3348 = vpow2.f32 %v2897_v45 }
 0xc66   :  { %v3347_v46 = vpop.eup %3346 }
 0xc67   :  { %v1222_v47 = vadd.f32 1.0, %v3347_v46 }
 0xc69   :  { %3350 = vrcp.f32 %v1222_v47 }
 0xc6c   :  { %v3349_v48 = vpop.eup %3348 }
 0xc6d   :  { %v1431_v49 = vadd.f32 1.0, %v3349_v48 }
 0xc6f   :  { %3352 = vrcp.f32 %v1431_v49 }
 0xc73   :  { %v3351_v50 = vpop.eup %3350 }
 0xc74   :  { %v1225_v51 = vmul.f32 2.0, %v3351_v50  ;;  %v1227_v60 = vmul.f32 %v3351_v50, %v3671_v2 }
 0xc76   :  { %v2892_v52 = vadd.f32 -1.0, %v1225_v51 }
 0xc78   :  { %1229 = vrot.lane.b32.xlu1 %v2892_v52, %s3459_s0 }
 0xc79   :  { %v3353_v53 = vpop.eup %3352 }
 0xc7a   :  { %v1434_v54 = vmul.f32 2.0, %v3353_v53  ;;  %v1439_v4 = vmul.f32 %v3353_v53, %v1437_v63 }
 0xc7c   :  { %v2898_v55 = vadd.f32 -1.0, %v1434_v54 }
 0xc7e   :  { %1441 = vrot.lane.b32.xlu0 %v2898_v55, %s3459_s0 }
 0xcea   :  { %v1230_v56 = vpop.permute.xlu1 %1229 }
 0xceb   :  { %v1232_v57 = vmul.f32 %v3351_v50, %v1230_v56 }
 0xced   :  { %1234 = vrot.lane.b32.xlu1 %v1232_v57, %s3460_s24 }
 0xcf0   :  { %v1442_v58 = vpop.permute.xlu0 %1441 }
 0xcf1   :  { %v1444_v59 = vmul.f32 %v3353_v53, %v1442_v58 }
 0xcf3   :  { %1446 = vrot.lane.b32.xlu0 %v1444_v59, %s3460_s24 }
 0xd5f   :  { %v1235_v61 = vpop.permute.xlu1 %1234 }
 0xd60   :  { %v3718_v62 = vadd.f32 %v1235_v61, %v1227_v60 }
 0xd62   :  { %3354 = vtanh.f32 %v3718_v62 }
 0xd65   :  { %v1447_v5 = vpop.permute.xlu0 %1446 }
 0xd66   :  { %v3722_v9 = vadd.f32 %v1447_v5, %v1439_v4 }
 0xd68   :  { %3356 = vtanh.f32 %v3722_v9  ;;  %v1758_v63 = vrot.slane %v3722_v9, 7 }
 0xd6c   :  { %v3355_v13 = vpop.eup %3354 }
 0xd6d   :  { %1240 = vrot.lane.b32.xlu1 %v3355_v13, %s3461_s25 }
 0xd72   :  { %v3357_v18 = vpop.eup %3356 }
 0xd73   :  { %1452 = vrot.lane.b32.xlu0 %v3357_v18, %s3461_s25 }
 0xddf   :  { %v1241_v2 = vpop.permute.xlu1 %1240 }
 0xde0   :  { %v1243_v6 = vmul.f32 %v3351_v50, %v1241_v2 }
 0xde2   :  { %1245 = vrot.lane.b32.xlu1 %v1243_v6, %s3462_s26  ;;  %v1460_v19 = vrot.slane %v1243_v6, 4 }
 0xde5   :  { %v1453_v12 = vpop.permute.xlu0 %1452 }
 0xde6   :  { %v1455_v10 = vmul.f32 %v3353_v53, %v1453_v12  ;;  %1461 = vrot.lane.b32.xlu1 %v1460_v19, %s3459_s0 }
 0xde8   :  { %1457 = vrot.lane.b32.xlu0 %v1455_v10, %s3462_s26  ;;  %v1669_v15 = vrot.slane %v1455_v10, 4 }
 0xdec   :  { %1670 = vrot.lane.b32.xlu0 %v1669_v15, %s3462_s26 }
 0xe54   :  { %v1246_v20 = vpop.permute.xlu1 %1245 }
 0xe55   :  { %3105 = vmatmul.mubr.msk.f32.vlgmr.msra.gmra.mrb[10].mxu1 %vm66_vm8, %v1246_v20 }
 0xe56   :  { %3249 = vmatpush3.bf16.msra.mxu1 %v3535_v34  ;;  %3120 = vmatprep.mubr.msk.f32.mxu1 %vm3454_vm0, %v3455_v1 }
 0xe57   :  { %3118 = vmatprep.subr.mxu1 %v3455_v1 }
 0xe58   :  { %v1462_v22 = vpop.permute.xlu1 %1461 }
 0xe5a   :  { %v1458_v17 = vpop.permute.xlu0 %1457  ;;  %3119 = vmatpush3.msk.msra.mxu1 %vm180_vm7, %v3539_v35 }
 0xe5b   :  { %v1464_v23 = vsel %vm66_vm8, %v1458_v17, %v1462_v22  ;;  %3254 = vmatprep.subr.bf16.mxu1 %v3453_v0 }
 0xe5c   :  { %v1466_v24 = vrot.slane %v1464_v23, 4 }
 0xe5e   :  { %3121 = vmatmul.mubr.msk.f32.vlgmr.msra.gmra.mrb[12].mxu1 %vm176_vm9, %v1466_v24  ;;  %v1671_v25 = vpop.permute.xlu0 %1670 }
 0xe5f   :  { %3257 = vmatpush3.bf16.msk.msra.mxu1 %vm3503_vm3, %v3510_v7  ;;  %3134 = vmatprep.mubr.msk.f32.mxu1 %vm3454_vm0, %v3455_v1 }
 0xe60   :  { %3261 = vmatprep.subr.bf16.mxu1 %v3453_v0 }
 0xe62   :  { %3135 = vmatmul.mubr.msk.f32.vlgmr.msra.gmra.mrb[14].mxu1 %vm66_vm8, %v1671_v25 }
 0xe63   :  { %3264 = vmatpush3.bf16.msk.msra.mxu1 %vm3503_vm3, %v3575_v21  ;;  %3150 = vmatprep.mubr.msk.f32.mxu1 %vm3454_vm0, %v3455_v1 }
 0xe64   :  { %3269 = vmatprep.subr.bf16.mxu1 %v3453_v0 }
 0xf28   :  { %v3754_v26 = vpop.f32.mrb[10].mxu1 }
 0xf29   :  { %v3106_v27 = vpop.f32.mrb[11].mxu1 }
 0xf31   :  { %v1535_v29 = vpop.f32.mrb[12].mxu1 }
 0xf32   :  { %v1536_v30 = vadd.f32 %v1535_v29, %v3557_v41  ;;  %v3122_v32 = vpop.f32.mrb[13].mxu1 }
 0xf34   :  { %v1539_v33 = vmul.f32 %v1536_v30, %v3526_v16 }
 0xf35   :  { %v1740_v36 = vpop.f32.mrb[14].mxu1 }
 0xf36   :  { %v2901_v38 = vmul.f32 -1.442695, %v1539_v33  ;;  %v1745_v39 = vrot.slane %v1740_v36, 3  ;;  %v3136_v40 = vpop.f32.mrb[15].mxu1 }
 0xf38   :  { %3358 = vpow2.f32 %v2901_v38  ;;  %v1747_v42 = vadd.f32 %v1745_v39, %v3524_v14 }
 0xf3a   :  { %v1748_v43 = vmul.f32 %v1747_v42, %v3526_v16 }
 0xf3c   :  { %v2907_v44 = vmul.f32 -1.442695, %v1748_v43 }
 0xf3e   :  { %3360 = vpow2.f32 %v2907_v44 }
 0xf42   :  { %v3359_v45 = vpop.eup %3358 }
 0xf43   :  { %v1543_v46 = vadd.f32 1.0, %v3359_v45 }
 0xf45   :  { %3362 = vrcp.f32 %v1543_v46 }
 0xf48   :  { %v3361_v47 = vpop.eup %3360 }
 0xf49   :  { %v1752_v48 = vadd.f32 1.0, %v3361_v47 }
 0xf4b   :  { %3364 = vrcp.f32 %v1752_v48 }
 0xf4f   :  { %v3363_v49 = vpop.eup %3362 }
 0xf50   :  { %v1546_v50 = vmul.f32 2.0, %v3363_v49  ;;  %v1548_v59 = vmul.f32 %v3363_v49, %v3718_v62 }
 0xf52   :  { %v2902_v51 = vadd.f32 -1.0, %v1546_v50 }
 0xf54   :  { %1550 = vrot.lane.b32.xlu1 %v2902_v51, %s3459_s0 }
 0xf55   :  { %v3365_v52 = vpop.eup %3364 }
 0xf56   :  { %v1755_v53 = vmul.f32 2.0, %v3365_v52  ;;  %v1760_v4 = vmul.f32 %v3365_v52, %v1758_v63 }
 0xf58   :  { %v2908_v54 = vadd.f32 -1.0, %v1755_v53 }
 0xf5a   :  { %1762 = vrot.lane.b32.xlu0 %v2908_v54, %s3459_s0 }
 0xfc6   :  { %v1551_v55 = vpop.permute.xlu1 %1550 }
 0xfc7   :  { %v1553_v56 = vmul.f32 %v3363_v49, %v1551_v55 }
 0xfc9   :  { %1555 = vrot.lane.b32.xlu1 %v1553_v56, %s3460_s24 }
 0xfcc   :  { %v1763_v57 = vpop.permute.xlu0 %1762 }
 0xfcd   :  { %v1765_v58 = vmul.f32 %v3365_v52, %v1763_v57 }
 0xfcf   :  { %1767 = vrot.lane.b32.xlu0 %v1765_v58, %s3460_s24 }
0x103b   :  { %v1556_v60 = vpop.permute.xlu1 %1555 }
0x103c   :  { %v3765_v61 = vadd.f32 %v1556_v60, %v1548_v59 }
0x103e   :  { %3366 = vtanh.f32 %v3765_v61 }
0x1041   :  { %v1768_v5 = vpop.permute.xlu0 %1767 }
0x1042   :  { %v3769_v13 = vadd.f32 %v1768_v5, %v1760_v4 }
0x1044   :  { %3368 = vtanh.f32 %v3769_v13  ;;  %v2079_v4 = vrot.slane %v3769_v13, 7 }
0x1048   :  { %v3367_v18 = vpop.eup %3366 }
0x1049   :  { %1561 = vrot.lane.b32.xlu1 %v3367_v18, %s3461_s25 }
0x104e   :  { %v3369_v2 = vpop.eup %3368 }
0x104f   :  { %1773 = vrot.lane.b32.xlu0 %v3369_v2, %s3461_s25 }
0x10bb   :  { %v1562_v62 = vpop.permute.xlu1 %1561 }
0x10bc   :  { %v1564_v6 = vmul.f32 %v3363_v49, %v1562_v62 }
0x10be   :  { %1566 = vrot.lane.b32.xlu1 %v1564_v6, %s3462_s26  ;;  %v1781_v19 = vrot.slane %v1564_v6, 3 }
0x10c1   :  { %v1774_v9 = vpop.permute.xlu0 %1773 }
0x10c2   :  { %v1776_v12 = vmul.f32 %v3365_v52, %v1774_v9  ;;  %1782 = vrot.lane.b32.xlu1 %v1781_v19, %s3459_s0 }
0x10c4   :  { %1778 = vrot.lane.b32.xlu0 %v1776_v12, %s3462_s26  ;;  %v1990_v10 = vrot.slane %v1776_v12, 5 }
0x10c8   :  { %1991 = vrot.lane.b32.xlu0 %v1990_v10, %s3462_s26 }
0x1130   :  { %v1567_v15 = vpop.permute.xlu1 %1566 }
0x1131   :  { %3128 = vmatmul.mubr.msk.f32.vlgmr.msra.gmra.mrb[14].mxu0 %vm66_vm8, %v1567_v15 }
0x1132   :  { %3260 = vmatpush3.bf16.msra.mxu0 %v3535_v34  ;;  %3143 = vmatprep.mubr.msk.f32.mxu0 %vm3454_vm0, %v3455_v1 }
0x1133   :  { %3141 = vmatprep.subr.mxu0 %v3455_v1 }
0x1134   :  { %v1783_v20 = vpop.permute.xlu1 %1782 }
0x1136   :  { %v1779_v22 = vpop.permute.xlu0 %1778  ;;  %3142 = vmatpush3.msk.msra.mxu0 %vm180_vm7, %v3539_v35 }
0x1137   :  { %v1785_v17 = vsel %vm66_vm8, %v1779_v22, %v1783_v20  ;;  %3265 = vmatprep.subr.bf16.mxu0 %v3453_v0 }
0x1138   :  { %v1787_v23 = vrot.slane %v1785_v17, 5 }
0x113a   :  { %3144 = vmatmul.mubr.msk.f32.vlgmr.msra.gmra.mrb[16].mxu0 %vm176_vm9, %v1787_v23  ;;  %v1992_v24 = vpop.permute.xlu0 %1991 }
0x113b   :  { %3268 = vmatpush3.bf16.msk.msra.mxu0 %vm3503_vm3, %v3510_v7  ;;  %3157 = vmatprep.mubr.msk.f32.mxu0 %vm3454_vm0, %v3455_v1 }
0x113c   :  { %3272 = vmatprep.subr.bf16.mxu0 %v3453_v0 }
0x113e   :  { %3158 = vmatmul.mubr.msk.f32.vlgmr.msra.gmra.mrb[18].mxu0 %vm66_vm8, %v1992_v24 }
0x113f   :  { %3275 = vmatpush3.bf16.msk.msra.mxu0 %vm3503_vm3, %v3575_v21  ;;  %3173 = vmatprep.mubr.msk.f32.mxu0 %vm3454_vm0, %v3455_v1 }
0x1140   :  { %3280 = vmatprep.subr.bf16.mxu0 %v3453_v0 }
0x1204   :  { %v3801_v25 = vpop.f32.mrb[14].mxu0 }
0x1205   :  { %v3129_v27 = vpop.f32.mrb[15].mxu0 }
0x120d   :  { %v1856_v29 = vpop.f32.mrb[16].mxu0 }
0x120e   :  { %v1857_v30 = vadd.f32 %v1856_v29, %v3557_v41  ;;  %v3145_v32 = vpop.f32.mrb[17].mxu0 }
0x1210   :  { %v1860_v33 = vmul.f32 %v1857_v30, %v3526_v16 }
0x1211   :  { %v2061_v36 = vpop.f32.mrb[18].mxu0 }
0x1212   :  { %v2911_v38 = vmul.f32 -1.442695, %v1860_v33  ;;  %v2066_v39 = vrot.slane %v2061_v36, 2  ;;  %v3159_v40 = vpop.f32.mrb[19].mxu0 }
0x1214   :  { %3370 = vpow2.f32 %v2911_v38  ;;  %v2068_v42 = vadd.f32 %v2066_v39, %v3524_v14 }
0x1216   :  { %v2069_v43 = vmul.f32 %v2068_v42, %v3526_v16 }
0x1218   :  { %v2917_v44 = vmul.f32 -1.442695, %v2069_v43 }
0x121a   :  { %3372 = vpow2.f32 %v2917_v44 }
0x121e   :  { %v3371_v45 = vpop.eup %3370 }
0x121f   :  { %v1864_v46 = vadd.f32 1.0, %v3371_v45 }
0x1221   :  { %3374 = vrcp.f32 %v1864_v46 }
0x1224   :  { %v3373_v47 = vpop.eup %3372 }
0x1225   :  { %v2073_v48 = vadd.f32 1.0, %v3373_v47 }
0x1227   :  { %3376 = vrcp.f32 %v2073_v48 }
0x122b   :  { %v3375_v49 = vpop.eup %3374 }
0x122c   :  { %v1867_v50 = vmul.f32 2.0, %v3375_v49  ;;  %v1869_v59 = vmul.f32 %v3375_v49, %v3765_v61 }
0x122e   :  { %v2912_v51 = vadd.f32 -1.0, %v1867_v50 }
0x1230   :  { %1871 = vrot.lane.b32.xlu1 %v2912_v51, %s3459_s0 }
0x1231   :  { %v3377_v52 = vpop.eup %3376 }
0x1232   :  { %v2076_v53 = vmul.f32 2.0, %v3377_v52  ;;  %v2081_v5 = vmul.f32 %v3377_v52, %v2079_v4 }
0x1234   :  { %v2918_v54 = vadd.f32 -1.0, %v2076_v53 }
0x1236   :  { %2083 = vrot.lane.b32.xlu0 %v2918_v54, %s3459_s0 }
0x12a2   :  { %v1872_v55 = vpop.permute.xlu1 %1871 }
0x12a3   :  { %v1874_v56 = vmul.f32 %v3375_v49, %v1872_v55 }
0x12a5   :  { %1876 = vrot.lane.b32.xlu1 %v1874_v56, %s3460_s24 }
0x12a8   :  { %v2084_v57 = vpop.permute.xlu0 %2083 }
0x12a9   :  { %v2086_v58 = vmul.f32 %v3377_v52, %v2084_v57 }
0x12ab   :  { %2088 = vrot.lane.b32.xlu0 %v2086_v58, %s3460_s24 }
0x1317   :  { %v1877_v60 = vpop.permute.xlu1 %1876 }
0x1318   :  { %v3812_v63 = vadd.f32 %v1877_v60, %v1869_v59 }
0x131a   :  { %3378 = vtanh.f32 %v3812_v63 }
0x131d   :  { %v2089_v18 = vpop.permute.xlu0 %2088 }
0x131e   :  { %v3816_v2 = vadd.f32 %v2089_v18, %v2081_v5  ;;  %v3865_v5 = vshrl.u32 %v39_v8, 7  ;;  %v3463_v18 = vmov -10000.0  }
0x1320   :  { %3380 = vtanh.f32 %v3816_v2  ;;  %v2400_v56 = vrot.slane %v3816_v2, 7  ;;  %vm64_vm10 = vcmp.eq.s32.totalorder %v3865_v5, 2  ;;  %vm3888_vm12 = vcmp.eq.s32.totalorder %v3865_v5, %v3520_v11 }
0x1321   :  { %v65_v2 = vsel %vm64_vm10, 0.0, %v3463_v18 }
0x1324   :  { %v3379_v62 = vpop.eup %3378 }
0x1325   :  { %1882 = vrot.lane.b32.xlu1 %v3379_v62, %s3461_s25 }
0x132a   :  { %v3381_v6 = vpop.eup %3380 }
0x132b   :  { %2094 = vrot.lane.b32.xlu0 %v3381_v6, %s3461_s25 }
0x1397   :  { %v1883_v61 = vpop.permute.xlu1 %1882 }
0x1398   :  { %v1885_v19 = vmul.f32 %v3375_v49, %v1883_v61 }
0x139a   :  { %1887 = vrot.lane.b32.xlu1 %v1885_v19, %s3462_s26  ;;  %v2102_v9 = vrot.slane %v1885_v19, 2 }
0x139d   :  { %v2095_v13 = vpop.permute.xlu0 %2094 }
0x139e   :  { %v2097_v12 = vmul.f32 %v3377_v52, %v2095_v13  ;;  %2103 = vrot.lane.b32.xlu1 %v2102_v9, %s3459_s0 }
0x13a0   :  { %2099 = vrot.lane.b32.xlu0 %v2097_v12, %s3462_s26  ;;  %v2311_v10 = vrot.slane %v2097_v12, 6 }
0x13a4   :  { %2312 = vrot.lane.b32.xlu0 %v2311_v10, %s3462_s26 }
0x140c   :  { %v1888_v15 = vpop.permute.xlu1 %1887 }
0x140d   :  { %3151 = vmatmul.mubr.msk.f32.vlgmr.msra.gmra.mrb[16].mxu1 %vm66_vm8, %v1888_v15 }
0x140e   :  { %3271 = vmatpush3.bf16.msra.mxu1 %v3535_v34  ;;  %3166 = vmatprep.mubr.msk.f32.mxu1 %vm3454_vm0, %v3455_v1 }
0x140f   :  { %3164 = vmatprep.subr.mxu1 %v3455_v1 }
0x1410   :  { %v2104_v20 = vpop.permute.xlu1 %2103 }
0x1412   :  { %v2100_v22 = vpop.permute.xlu0 %2099  ;;  %3165 = vmatpush3.msk.msra.mxu1 %vm180_vm7, %v3539_v35 }
0x1413   :  { %v2106_v17 = vsel %vm66_vm8, %v2100_v22, %v2104_v20  ;;  %3276 = vmatprep.subr.bf16.mxu1 %v3453_v0 }
0x1414   :  { %v2108_v23 = vrot.slane %v2106_v17, 6  ;;  %v3875_v17 = vld [vmem:[#allocation2 + $0x32] sm:$0x1] }
0x1416   :  { %3167 = vmatmul.mubr.msk.f32.vlgmr.msra.gmra.mrb[18].mxu1 %vm176_vm9, %v2108_v23  ;;  %v2313_v24 = vpop.permute.xlu0 %2312  ;;  %v3879_v23 = vadd.f32 %v3613_v37, %v3875_v17 }
0x1417   :  { %3279 = vmatpush3.bf16.msk.msra.mxu1 %vm3503_vm3, %v3510_v7  ;;  %3180 = vmatprep.mubr.msk.f32.mxu1 %vm3454_vm0, %v3455_v1 }
0x1418   :  { %3283 = vmatprep.subr.bf16.mxu1 %v3453_v0 }
0x141a   :  { %3181 = vmatmul.mubr.msk.f32.vlgmr.msra.gmra.mrb[20].mxu1 %vm66_vm8, %v2313_v24 }
0x141b   :  { %3286 = vmatpush3.bf16.msk.msra.mxu1 %vm3503_vm3, %v3575_v21  ;;  %3196 = vmatprep.mubr.msk.f32.mxu1 %vm3454_vm0, %v3455_v1 }
0x14e0   :  { %v3847_v35 = vpop.f32.mrb[16].mxu1 }
0x14e1   :  { %v3152_v27 = vpop.f32.mrb[17].mxu1 }
0x14e9   :  { %v2177_v29 = vpop.f32.mrb[18].mxu1 }
0x14ea   :  { %v2178_v7 = vadd.f32 %v2177_v29, %v3557_v41  ;;  %v3168_v30 = vpop.f32.mrb[19].mxu1  ;;  %v3883_v29 = vsub.s32 0, %v3865_v5 }
0x14ec   :  { %v2181_v32 = vmul.f32 %v2178_v7, %v3526_v16 }
0x14ed   :  { %v2382_v0 = vpop.f32.mrb[20].mxu1 }
0x14ee   :  { %v2921_v33 = vmul.f32 -1.442695, %v2181_v32  ;;  %v2387_v36 = vrot.slane %v2382_v0, 1  ;;  %v3182_v38 = vpop.f32.mrb[21].mxu1 }
0x14ef   :  { %v3400_v38 = vld [vmem:[#allocation2 + $0x20] sm:$0xf] }
0x14f0   :  { %3382 = vpow2.f32 %v2921_v33  ;;  %v2389_v3 = vadd.f32 %v2387_v36, %v3524_v14 }
0x14f2   :  { %v2390_v21 = vmul.f32 %v2389_v3, %v3526_v16 }
0x14f4   :  { %v2927_v39 = vmul.f32 -1.442695, %v2390_v21 }
0x14f6   :  { %3384 = vpow2.f32 %v2927_v39 }
0x14fa   :  { %v3383_v40 = vpop.eup %3382 }
0x14fb   :  { %v2185_v42 = vadd.f32 1.0, %v3383_v40 }
0x14fd   :  { %3386 = vrcp.f32 %v2185_v42 }
0x1500   :  { %v3385_v43 = vpop.eup %3384 }
0x1501   :  { %v2394_v44 = vadd.f32 1.0, %v3385_v43 }
0x1503   :  { %3388 = vrcp.f32 %v2394_v44 }
0x1507   :  { %v3387_v41 = vpop.eup %3386 }
0x1508   :  { %v2188_v45 = vmul.f32 2.0, %v3387_v41  ;;  %v2190_v53 = vmul.f32 %v3387_v41, %v3812_v63  ;;  %v3868_v63 = vld [vmem:[#allocation2 + $0x34] sm:$0xf] }
0x1509   :  { %v358_v62 = vadd.f32 %v65_v2, %v3868_v63 }
0x150a   :  { %v2922_v46 = vadd.f32 -1.0, %v2188_v45 }
0x150b   :  { %v360_v61 = vsel %vm359_vm11, %v358_v62, -inf }
0x150c   :  { %2192 = vrot.lane.b32.xlu1 %v2922_v46, %s3459_s0  ;;  %v361_v9 = vrot.slane %v360_v61, 4 }
0x150d   :  { %v3389_v47 = vpop.eup %3388 }
0x150e   :  { %v2397_v48 = vmul.f32 2.0, %v3389_v47  ;;  %v2402_v57 = vmul.f32 %v3389_v47, %v2400_v56  ;;  %v362_v10 = vmax.f32 %v360_v61, %v361_v9 }
0x1510   :  { %v2928_v49 = vadd.f32 -1.0, %v2397_v48  ;;  %v363_v15 = vrot.slane %v362_v10, 2 }
0x1512   :  { %2404 = vrot.lane.b32.xlu0 %v2928_v49, %s3459_s0  ;;  %v364_v20 = vmax.f32 %v362_v10, %v363_v15 }
0x1514   :  { %v365_v22 = vrot.slane %v364_v20, 1 }
0x1516   :  { %v366_v24 = vmax.f32 %v364_v20, %v365_v22 }
0x1518   :  { %v379_v27 = vadd.f32 %v366_v24, %v3879_v23  ;;  %vm367_vm13 = vcmp.ge.f32.partialorder %v358_v62, %v366_v24 }
0x1519   :  { %v368_v39 = vsel %vm367_vm13, %v3865_v5, 4 }
0x151a   :  { %v383_v7 = vrot.slane %v379_v27, %v3883_v29 }
0x151c   :  { %v384_v32 = vsel %vm3888_vm12, %v383_v7, 0.0 }
0x151d   :  { %v385_v37 = vsel %vm359_vm11, %v384_v32, 0.0 }
0x157e   :  { %v2193_v14 = vpop.permute.xlu1 %2192 }
0x157f   :  { %v2195_v50 = vmul.f32 %v3387_v41, %v2193_v14  ;;  %v3909_v14 = vadd.f32 %v3660_v31, %v3875_v17 }
0x1581   :  { %2197 = vrot.lane.b32.xlu1 %v2195_v50, %s3460_s24 }
0x1584   :  { %v2405_v51 = vpop.permute.xlu0 %2404 }
0x1585   :  { %v2407_v52 = vmul.f32 %v3389_v47, %v2405_v51 }
0x1587   :  { %2409 = vrot.lane.b32.xlu0 %v2407_v52, %s3460_s24 }
0x15f3   :  { %v2198_v54 = vpop.permute.xlu1 %2197 }
0x15f4   :  { %v3858_v55 = vadd.f32 %v2198_v54, %v2190_v53 }
0x15f6   :  { %3390 = vtanh.f32 %v3858_v55 }
0x15f9   :  { %v2410_v58 = vpop.permute.xlu0 %2409 }
0x15fa   :  { %v2412_v59 = vadd.f32 %v2410_v58, %v2402_v57 }
0x15fc   :  { %3392 = vtanh.f32 %v2412_v59 }
0x1600   :  { %v3391_v60 = vpop.eup %3390 }
0x1601   :  { %2203 = vrot.lane.b32.xlu1 %v3391_v60, %s3461_s25 }
0x1606   :  { %v3393_v4 = vpop.eup %3392 }
0x1607   :  { %2415 = vrot.lane.b32.xlu0 %v3393_v4, %s3461_s25 }
0x1673   :  { %v2204_v6 = vpop.permute.xlu1 %2203 }
0x1674   :  { %v2206_v19 = vmul.f32 %v3387_v41, %v2204_v6 }
0x1676   :  { %2208 = vrot.lane.b32.xlu1 %v2206_v19, %s3462_s26  ;;  %v2423_v13 = vrot.slane %v2206_v19, 1 }
0x1679   :  { %v2416_v12 = vpop.permute.xlu0 %2415 }
0x167a   :  { %v2418_v8 = vmul.f32 %v3389_v47, %v2416_v12  ;;  %2424 = vrot.lane.b32.xlu1 %v2423_v13, %s3459_s0  ;;  %v3401_v12 = vld [vmem:[#allocation2 + $0x3a] sm:$0x1] }
0x167c   :  { %2420 = vrot.lane.b32.xlu0 %v2418_v8, %s3462_s26 }
0x169b   :  { %386 = vadd.xlane.f32.xlu0 %v385_v37 }
0x16e8   :  { %v2209_v0 = vpop.permute.xlu1 %2208 }
0x16e9   :  { %3174 = vmatmul.mubr.msk.f32.vlgmr.msra.gmra.mrb[20].mxu0 %vm66_vm8, %v2209_v0 }
0x16ea   :  { %3282 = vmatpush3.bf16.msra.mxu0 %v3535_v34  ;;  %3189 = vmatprep.mubr.msk.f32.mxu0 %vm3454_vm0, %v3455_v1  ;;  %v369_v34 = vsel %vm359_vm11, %v368_v39, 2147483647 }
0x16eb   :  { %3187 = vmatprep.subr.mxu0 %v3455_v1  ;;  %v370_v42 = vrot.slane %v369_v34, 4 }
0x16ec   :  { %v2425_v33 = vpop.permute.xlu1 %2424 }
0x16ed   :  { %vm371_vm14 = vcmp.lt.s32.totalorder %v369_v34, %v370_v42 }
0x16ee   :  { %v2421_v36 = vpop.permute.xlu0 %2420  ;;  %3188 = vmatpush3.msk.msra.mxu0 %vm180_vm7, %v3400_v38  ;;  %v372_v45 = vsel %vm371_vm14, %v369_v34, %v370_v42 }
0x16ef   :  { %v2427_v3 = vsel %vm66_vm8, %v2421_v36, %v2425_v33  ;;  %v373_v48 = vrot.slane %v372_v45, 2 }
0x16f0   :  { %v2429_v21 = vrot.slane %v2427_v3, 7  ;;  %v3934_v3 = vadd.f32 %v3707_v28, %v3875_v17 }
0x16f1   :  { %vm374_vm15 = vcmp.lt.s32.totalorder %v372_v45, %v373_v48 }
0x16f2   :  { %3190 = vmatmul.mubr.msk.f32.vlgmr.msra.gmra.mrb[22].mxu0 %vm176_vm9, %v2429_v21  ;;  %v375_v56 = vsel %vm374_vm15, %v372_v45, %v373_v48  ;;  %vm2625_vm15 = vcmask 24576  }
0x16f3   :  { %v376_v59 = vrot.slane %v375_v56, 1 }
0x16f5   :  { %vm377_vm4 = vcmp.lt.s32.totalorder %v375_v56, %v376_v59 }
0x16f6   :  { %v378_v62 = vsel %vm377_vm4, %v375_v56, %v376_v59 }
0x1728   :  { %v387_v40 = vpop.xlane.xlu0 %386 }
0x1729   :  { %v677_v43 = vadd.f32 %v387_v40, %v3868_v63 }
0x172b   :  { %v678_v1 = vsel %vm359_vm11, %v677_v43, -inf }
0x172c   :  { %v679_v44 = vrot.slane %v678_v1, 4 }
0x172e   :  { %v680_v41 = vmax.f32 %v678_v1, %v679_v44 }
0x1730   :  { %v681_v46 = vrot.slane %v680_v41, 2 }
0x1732   :  { %v682_v47 = vmax.f32 %v680_v41, %v681_v46 }
0x1734   :  { %v683_v49 = vrot.slane %v682_v47, 1 }
0x1736   :  { %v684_v50 = vmax.f32 %v682_v47, %v683_v49 }
0x1738   :  { %vm685_vm0 = vcmp.ge.f32.partialorder %v677_v43, %v684_v50  ;;  %v697_v51 = vadd.f32 %v684_v50, %v3909_v14 }
0x1739   :  { %v686_v52 = vsel %vm685_vm0, %v3865_v5, 4 }
0x173a   :  { %v687_v53 = vsel %vm359_vm11, %v686_v52, 2147483647  ;;  %v701_v54 = vrot.slane %v697_v51, %v3883_v29  ;;  %v3955_v52 = vadd.f32 %v3754_v26, %v3875_v17 }
0x173b   :  { %v688_v57 = vrot.slane %v687_v53, 4 }
0x173c   :  { %v702_v58 = vsel %vm3888_vm12, %v701_v54, 0.0 }
0x173d   :  { %vm689_vm2 = vcmp.lt.s32.totalorder %v687_v53, %v688_v57  ;;  %v703_v31 = vsel %vm359_vm11, %v702_v58, 0.0 }
0x173e   :  { %v690_v60 = vsel %vm689_vm2, %v687_v53, %v688_v57  ;;  %704 = vadd.xlane.f32.xlu1 %v703_v31 }
0x173f   :  { %v691_v4 = vrot.slane %v690_v60, 2 }
0x1741   :  { %vm692_vm3 = vcmp.lt.s32.totalorder %v690_v60, %v691_v4 }
0x1742   :  { %v693_v18 = vsel %vm692_vm3, %v690_v60, %v691_v4 }
0x1743   :  { %v694_v2 = vrot.slane %v693_v18, 1 }
0x1745   :  { %vm695_vm5 = vcmp.lt.s32.totalorder %v693_v18, %v694_v2 }
0x1746   :  { %v3918_v6 = vsel %vm695_vm5, %v693_v18, %v694_v2 }
0x1747   :  { %v3922_v61 = vsel %vm2795_vm6, %v378_v62, %v3918_v6 }
0x17bc   :  { %v3924_v19 = vpop.f32.mrb[20].mxu0 }
0x17bd   :  { %v3175_v9 = vpop.f32.mrb[21].mxu0 }
0x17c5   :  { %v2498_v13 = vpop.f32.mrb[22].mxu0 }
0x17c6   :  { %v2499_v8 = vadd.f32 %v3401_v12, %v2498_v13  ;;  %v3191_v10 = vpop.f32.mrb[23].mxu0 }
0x17c8   :  { %v2502_v15 = vmul.f32 %v2499_v8, %v3526_v16 }
0x17ca   :  { %v2931_v20 = vmul.f32 -1.442695, %v2502_v15 }
0x17cb   :  { %v705_v22 = vpop.xlane.xlu1 %704 }
0x17cc   :  { %3394 = vpow2.f32 %v2931_v20  ;;  %v3928_v24 = vadd.f32 %v705_v22, %v3868_v63 }
0x17ce   :  { %v999_v27 = vsel %vm359_vm11, %v3928_v24, -inf }
0x17cf   :  { %v1000_v7 = vrot.slane %v999_v27, 4 }
0x17d1   :  { %v1001_v32 = vmax.f32 %v999_v27, %v1000_v7 }
0x17d3   :  { %v1002_v37 = vrot.slane %v1001_v32, 2 }
0x17d5   :  { %v1003_v0 = vmax.f32 %v1001_v32, %v1002_v37 }
0x17d6   :  { %v3395_v33 = vpop.eup %3394 }
0x17d7   :  { %v2506_v36 = vadd.f32 1.0, %v3395_v33  ;;  %v1004_v38 = vrot.slane %v1003_v0, 1 }
0x17d9   :  { %3396 = vrcp.f32 %v2506_v36  ;;  %v3936_v16 = vmax.f32 %v1003_v0, %v1004_v38 }
0x17db   :  { %vm1006_vm9 = vcmp.ge.f32.partialorder %v3928_v24, %v3936_v16  ;;  %v1018_v21 = vadd.f32 %v3936_v16, %v3934_v3 }
0x17dd   :  { %v1022_v39 = vrot.slane %v1018_v21, %v3883_v29 }
0x17df   :  { %v1023_v34 = vsel %vm3888_vm12, %v1022_v39, 0.0 }
0x17e0   :  { %v1024_v40 = vsel %vm359_vm11, %v1023_v34, 0.0  ;;  %v3996_v34 = vadd.f32 %v3847_v35, %v3875_v17 }
0x17e1   :  { %1025 = vadd.xlane.f32.xlu1 %v1024_v40 }
0x17e3   :  { %v3397_v42 = vpop.eup %3396 }
0x17e4   :  { %v2509_v28 = vmul.f32 2.0, %v3397_v42  ;;  %v2511_v31 = vmul.f32 %v3397_v42, %v3858_v55  ;;  %v3976_v55 = vadd.f32 %v3801_v25, %v3875_v17 }
0x17e6   :  { %v2932_v43 = vadd.f32 -1.0, %v2509_v28 }
0x17e8   :  { %2513 = vrot.lane.b32.xlu0 %v2932_v43, %s3459_s0 }
0x185a   :  { %v2514_v1 = vpop.permute.xlu0 %2513 }
0x185b   :  { %v2516_v44 = vmul.f32 %v3397_v42, %v2514_v1 }
0x185d   :  { %2518 = vrot.lane.b32.xlu1 %v2516_v44, %s3460_s24 }
0x186e   :  { %v1026_v41 = vpop.xlane.xlu1 %1025 }
0x186f   :  { %v3949_v45 = vadd.f32 %v1026_v41, %v3868_v63 }
0x1871   :  { %v1320_v46 = vsel %vm359_vm11, %v3949_v45, -inf }
0x1872   :  { %v1321_v47 = vrot.slane %v1320_v46, 4 }
0x1874   :  { %v1322_v48 = vmax.f32 %v1320_v46, %v1321_v47 }
0x1876   :  { %v1323_v49 = vrot.slane %v1322_v48, 2 }
0x1878   :  { %v1324_v50 = vmax.f32 %v1322_v48, %v1323_v49 }
0x187a   :  { %v1325_v51 = vrot.slane %v1324_v50, 1 }
0x187c   :  { %v3957_v53 = vmax.f32 %v1324_v50, %v1325_v51 }
0x187e   :  { %vm1327_vm10 = vcmp.ge.f32.partialorder %v3949_v45, %v3957_v53  ;;  %v1339_v54 = vadd.f32 %v3957_v53, %v3955_v52 }
0x1880   :  { %v1343_v56 = vrot.slane %v1339_v54, %v3883_v29  ;;  %v4016_v54 = vadd.f32 %v3924_v19, %v3875_v17 }
0x1882   :  { %v1344_v57 = vsel %vm3888_vm12, %v1343_v56, 0.0 }
0x1883   :  { %v1345_v58 = vsel %vm359_vm11, %v1344_v57, 0.0 }
0x1884   :  { %1346 = vadd.xlane.f32.xlu0 %v1345_v58 }
0x18cf   :  { %v2519_v26 = vpop.permute.xlu1 %2518 }
0x18d0   :  { %v2521_v59 = vadd.f32 %v2519_v26, %v2511_v31 }
0x18d2   :  { %3398 = vtanh.f32 %v2521_v59 }
0x18dc   :  { %v3399_v60 = vpop.eup %3398 }
0x18dd   :  { %2524 = vrot.lane.b32.xlu1 %v3399_v60, %s3461_s25 }
0x1911   :  { %v1347_v4 = vpop.xlane.xlu0 %1346 }
0x1912   :  { %v3970_v18 = vadd.f32 %v1347_v4, %v3868_v63 }
0x1914   :  { %v1641_v2 = vsel %vm359_vm11, %v3970_v18, -inf }
0x1915   :  { %v1642_v62 = vrot.slane %v1641_v2, 4 }
0x1917   :  { %v1643_v9 = vmax.f32 %v1641_v2, %v1642_v62 }
0x1919   :  { %v1644_v13 = vrot.slane %v1643_v9, 2 }
0x191b   :  { %v1645_v12 = vmax.f32 %v1643_v9, %v1644_v13 }
0x191d   :  { %v1646_v8 = vrot.slane %v1645_v12, 1 }
0x191f   :  { %v3978_v10 = vmax.f32 %v1645_v12, %v1646_v8 }
0x1921   :  { %vm1648_vm13 = vcmp.ge.f32.partialorder %v3970_v18, %v3978_v10  ;;  %v1660_v15 = vadd.f32 %v3978_v10, %v3976_v55 }
0x1923   :  { %v1664_v20 = vrot.slane %v1660_v15, %v3883_v29  ;;  %v34_v15 = vld [vmem:[#allocation2 + $0x33] sm:$0x1] }
0x1925   :  { %v1665_v22 = vsel %vm3888_vm12, %v1664_v20, 0.0 }
0x1926   :  { %v1666_v27 = vsel %vm359_vm11, %v1665_v22, 0.0 }
0x1927   :  { %1667 = vadd.xlane.f32.xlu1 %v1666_v27 }
0x194f   :  { %v2525_v7 = vpop.permute.xlu1 %2524 }
0x1950   :  { %v2527_v32 = vmul.f32 %v3397_v42, %v2525_v7 }
0x1952   :  { %2529 = vrot.lane.b32.xlu0 %v2527_v32, %s3462_s26 }
0x19b4   :  { %v1668_v25 = vpop.xlane.xlu1 %1667 }
0x19b5   :  { %v3990_v37 = vadd.f32 %v1668_v25, %v3868_v63 }
0x19b7   :  { %v1962_v0 = vsel %vm359_vm11, %v3990_v37, -inf }
0x19b8   :  { %v1963_v33 = vrot.slane %v1962_v0, 4 }
0x19ba   :  { %v1964_v36 = vmax.f32 %v1962_v0, %v1963_v33 }
0x19bc   :  { %v1965_v38 = vrot.slane %v1964_v36, 2 }
0x19be   :  { %v1966_v21 = vmax.f32 %v1964_v36, %v1965_v38 }
0x19c0   :  { %v1967_v39 = vrot.slane %v1966_v21, 1 }
0x19c2   :  { %v3998_v40 = vmax.f32 %v1966_v21, %v1967_v39 }
0x19c4   :  { %vm1969_vm14 = vcmp.ge.f32.partialorder %v3990_v37, %v3998_v40  ;;  %v2530_v42 = vpop.permute.xlu0 %2529  ;;  %v1981_v28 = vadd.f32 %v3998_v40, %v3996_v34 }
0x19c5   :  { %3197 = vmatmul.mubr.msk.f32.vlgmr.msra.gmra.mrb[22].mxu1 %vm66_vm8, %v2530_v42 }
0x19c6   :  { %v1985_v43 = vrot.slane %v1981_v28, %v3883_v29 }
0x19c8   :  { %v1986_v1 = vsel %vm3888_vm12, %v1985_v43, 0.0 }
0x19c9   :  { %v1987_v44 = vsel %vm359_vm11, %v1986_v1, 0.0 }
0x19ca   :  { %1988 = vadd.xlane.f32.xlu1 %v1987_v44 }
0x1a57   :  { %v1989_v35 = vpop.xlane.xlu1 %1988 }
0x1a58   :  { %v4010_v41 = vadd.f32 %v1989_v35, %v3868_v63 }
0x1a5a   :  { %v2283_v46 = vsel %vm359_vm11, %v4010_v41, -inf }
0x1a5b   :  { %v2284_v47 = vrot.slane %v2283_v46, 4 }
0x1a5d   :  { %v2285_v48 = vmax.f32 %v2283_v46, %v2284_v47 }
0x1a5f   :  { %v2286_v49 = vrot.slane %v2285_v48, 2 }
0x1a61   :  { %v2287_v50 = vmax.f32 %v2285_v48, %v2286_v49 }
0x1a63   :  { %v2288_v51 = vrot.slane %v2287_v50, 1 }
0x1a65   :  { %v4018_v56 = vmax.f32 %v2287_v50, %v2288_v51 }
0x1a67   :  { %vm2290_vm8 = vcmp.ge.f32.partialorder %v4010_v41, %v4018_v56  ;;  %v2302_v57 = vadd.f32 %v4018_v56, %v4016_v54 }
0x1a69   :  { %v2306_v58 = vrot.slane %v2302_v57, %v3883_v29 }
0x1a6b   :  { %v2307_v31 = vsel %vm3888_vm12, %v2306_v58, 0.0 }
0x1a6c   :  { %v2308_v26 = vsel %vm359_vm11, %v2307_v31, 0.0 }
0x1a6d   :  { %2309 = vadd.xlane.f32.xlu1 %v2308_v26 }
0x1a98   :  { %v2599_v59 = vpop.f32.mrb[22].mxu1 }
0x1a99   :  { %v3198_v60 = vpop.f32.mrb[23].mxu1  ;;  %v4031_v29 = vadd.f32 %v2599_v59, %v3875_v17 }
0x1a9a   :  { %v2291_v60 = vsel %vm2290_vm8, %v3865_v5, 4 }
0x1afa   :  { %v2310_v19 = vpop.xlane.xlu1 %2309 }
0x1afb   :  { %v2603_v4 = vadd.f32 %v2310_v19, %v3868_v63  ;;  %v2292_v19 = vsel %vm359_vm11, %v2291_v60, 2147483647 }
0x1afd   :  { %v2604_v2 = vsel %vm359_vm11, %v2603_v4, -inf }
0x1afe   :  { %v2605_v62 = vrot.slane %v2604_v2, 4 }
0x1b00   :  { %v2606_v9 = vmax.f32 %v2604_v2, %v2605_v62 }
0x1b02   :  { %v2607_v13 = vrot.slane %v2606_v9, 2 }
0x1b04   :  { %v2608_v12 = vmax.f32 %v2606_v9, %v2607_v13 }
0x1b06   :  { %v2609_v8 = vrot.slane %v2608_v12, 1 }
0x1b08   :  { %v2610_v30 = vmax.f32 %v2608_v12, %v2609_v8 }
0x1b0a   :  { %vm2611_vm12 = vcmp.ge.f32.partialorder %v2603_v4, %v2610_v30  ;;  %v2623_v20 = vadd.f32 %v2610_v30, %v4031_v29  ;;  %v2293_v4 = vrot.slane %v2292_v19, 4 }
0x1b0b   :  { %v2612_v21 = vsel %vm2611_vm12, %v3865_v5, 4 }
0x1b0c   :  { %v4034_v22 = vadd.f32 %v2623_v20, %v34_v15  ;;  %v2613_v39 = vsel %vm359_vm11, %v2612_v21, 2147483647  ;;  %vm2294_vm12 = vcmp.lt.s32.totalorder %v2292_v19, %v2293_v4  ;;  %v1970_v21 = vsel %vm1969_vm14, %v3865_v5, 4 }
0x1b0d   :  { %v2614_v42 = vrot.slane %v2613_v39, 4  ;;  %v2295_v2 = vsel %vm2294_vm12, %v2292_v19, %v2293_v4  ;;  %v1649_v4 = vsel %vm1648_vm13, %v3865_v5, 4 }
0x1b0e   :  { %v2626_v63 = vsel %vm2625_vm15, %v4034_v22, -inf  ;;  %v2296_v62 = vrot.slane %v2295_v2, 2 }
0x1b0f   :  { %2627 = vmax.xlane.f32.xlu1 %v2626_v63  ;;  %vm2615_vm3 = vcmp.lt.s32.totalorder %v2613_v39, %v2614_v42 }
0x1b10   :  { %v2616_v28 = vsel %vm2615_vm3, %v2613_v39, %v2614_v42  ;;  %vm2646_vm3 = vcmp.eq.s32.totalorder %v3520_v11, 7  ;;  %v1971_v39 = vsel %vm359_vm11, %v1970_v21, 2147483647  ;;  %v1328_v21 = vsel %vm1327_vm10, %v3865_v5, 4 }
0x1b11   :  { %v2617_v43 = vrot.slane %v2616_v28, 2  ;;  %v1972_v42 = vrot.slane %v1971_v39, 4 }
0x1b13   :  { %vm2618_vm4 = vcmp.lt.s32.totalorder %v2616_v28, %v2617_v43 }
0x1b14   :  { %v2619_v1 = vsel %vm2618_vm4, %v2616_v28, %v2617_v43  ;;  %vm2663_vm4 = vcmp.eq.s32.totalorder %v3520_v11, 6 }
0x1b15   :  { %v2620_v35 = vrot.slane %v2619_v1, 1 }
0x1b17   :  { %vm2621_vm5 = vcmp.lt.s32.totalorder %v2619_v1, %v2620_v35 }
0x1b18   :  { %v4048_v50 = vsel %vm2621_vm5, %v2619_v1, %v2620_v35 }
0x1b9c   :  { %v4038_v27 = vpop.xlane.xlu1 %2627 }
0x1b9d   :  { %vm2629_vm0 = vcmp.ge.f32.partialorder %v4034_v22, %v4038_v27 }
0x1b9e   :  { %v2630_v17 = vsel %vm2629_vm0, %v3520_v11, 4 }
0x1b9f   :  { %v2631_v7 = vsel %vm2625_vm15, %v2630_v17, 2147483647 }
0x1ba0   :  { %v2633_v32 = vshra.s32 %v2631_v7, 16  ;;  %v2632_v0 = vand.u32 65535, %v2631_v7 }
0x1ba2   :  { %v2635_v25 = vcvt.s32.f32 %v2633_v32  ;;  %v2634_v36 = vcvt.s32.f32 %v2632_v0 }
0x1ba4   :  { %2636 = vmin.xlane.f32.xlu0 %v2635_v25 }
0x1c31   :  { %v2637_v33 = vpop.xlane.xlu0 %2636 }
0x1c32   :  { %vm2638_vm2 = vcmp.eq.f32.partialorder %v2635_v25, %v2637_v33  ;;  %v2643_v44 = vcvt.f32.s32 %v2637_v33 }
0x1c33   :  { %v2639_v38 = vsel %vm2638_vm2, %v2634_v36, inf  ;;  %vm2297_vm2 = vcmp.lt.s32.totalorder %v2295_v2, %v2296_v62 }
0x1c34   :  { %2640 = vmin.xlane.f32.xlu1 %v2639_v38  ;;  %v2644_v47 = vshll.u32 %v2643_v44, 16  ;;  %v2298_v9 = vsel %vm2297_vm2, %v2295_v2, %v2296_v62  ;;  %v1650_v2 = vsel %vm359_vm11, %v1649_v4, 2147483647 }
0x1c35   :  { %v2299_v8 = vrot.slane %v2298_v9, 1  ;;  %v1651_v62 = vrot.slane %v1650_v2, 4 }
0x1c37   :  { %vm2300_vm5 = vcmp.lt.s32.totalorder %v2298_v9, %v2299_v8 }
0x1c38   :  { %v4060_v17 = vsel %vm2300_vm5, %v2298_v9, %v2299_v8 }
0x1cc1   :  { %v2641_v46 = vpop.xlane.xlu1 %2640 }
0x1cc2   :  { %v2642_v48 = vcvt.f32.s32 %v2641_v46 }
0x1cc4   :  { %v2645_v49 = vadd.s32 %v2644_v47, %v2642_v48 }
0x1cc6   :  { %vm2648_vm0 = vcmp.eq.s32.totalorder %v3520_v11, %v2645_v49  ;;  %v2647_v56 = vsel %vm2646_vm3, %v2645_v49, 0  ;;  %vm2681_vm3 = vcmp.eq.s32.totalorder %v3520_v11, 5 }
0x1cc7   :  { %v2649_v51 = vsel %vm2648_vm0, %v4048_v50, 0  ;;  %vm1973_vm0 = vcmp.lt.s32.totalorder %v1971_v39, %v1972_v42 }
0x1cc8   :  { %v2650_v57 = vsel %vm2625_vm15, %v2649_v51, 0  ;;  %v1974_v28 = vsel %vm1973_vm0, %v1971_v39, %v1972_v42  ;;  %v1329_v39 = vsel %vm359_vm11, %v1328_v21, 2147483647 }
0x1cc9   :  { %v2652_v58 = vshrl.u32 %v2650_v57, 16  ;;  %v2651_v26 = vand.u32 65535, %v2650_v57  ;;  %v1975_v43 = vrot.slane %v1974_v28, 2  ;;  %v1330_v42 = vrot.slane %v1329_v39, 4 }
0x1ccb   :  { %v2654_v31 = vcvt.s32.f32 %v2652_v58  ;;  %v2653_v59 = vcvt.s32.f32 %v2651_v26  ;;  %vm1976_vm12 = vcmp.lt.s32.totalorder %v1974_v28, %v1975_v43 }
0x1ccc   :  { %v1977_v1 = vsel %vm1976_vm12, %v1974_v28, %v1975_v43  ;;  %vm1331_vm12 = vcmp.lt.s32.totalorder %v1329_v39, %v1330_v42 }
0x1ccd   :  { %2657 = vadd.xlane.f32.xlu1 %v2654_v31  ;;  %v1978_v46 = vrot.slane %v1977_v1, 1  ;;  %v1332_v28 = vsel %vm1331_vm12, %v1329_v39, %v1330_v42  ;;  %vm2798_vm12 = vcmask 1042432  }
0x1cce   :  { %v1333_v43 = vrot.slane %v1332_v28, 2 }
0x1ccf   :  { %vm1979_vm2 = vcmp.lt.s32.totalorder %v1977_v1, %v1978_v46 }
0x1cd0   :  { %v4070_v37 = vsel %vm1979_vm2, %v1977_v1, %v1978_v46  ;;  %vm1334_vm2 = vcmp.lt.s32.totalorder %v1332_v28, %v1333_v43 }
0x1cd1   :  { %2655 = vadd.xlane.f32.xlu1 %v2653_v59  ;;  %v1335_v1 = vsel %vm1334_vm2, %v1332_v28, %v1333_v43  ;;  %vm2801_vm2 = vcmask 1044480  }
0x1cd2   :  { %v1336_v46 = vrot.slane %v1335_v1, 1 }
0x1d5a   :  { %v2658_v13 = vpop.xlane.xlu1 %2657 }
0x1d5b   :  { %v2660_v12 = vcvt.f32.s32 %v2658_v13 }
0x1d5d   :  { %v2661_v15 = vshll.u32 %v2660_v12, 16 }
0x1d5e   :  { %v2656_v30 = vpop.xlane.xlu1 %2655 }
0x1d5f   :  { %v2659_v20 = vcvt.f32.s32 %v2656_v30 }
0x1d61   :  { %v2662_v41 = vadd.s32 %v2661_v15, %v2659_v20 }
0x1d63   :  { %v2664_v63 = vsel %vm2663_vm4, %v2662_v41, 0  ;;  %vm2666_vm8 = vcmp.eq.s32.totalorder %v3520_v11, %v2662_v41  ;;  %vm1652_vm4 = vcmp.lt.s32.totalorder %v1650_v2, %v1651_v62 }
0x1d64   :  { %v2665_v7 = vadd.s32 %v2664_v63, %v2647_v56  ;;  %v2667_v32 = vsel %vm2666_vm8, %v4060_v17, 0  ;;  %v1653_v9 = vsel %vm1652_vm4, %v1650_v2, %v1651_v62  ;;  %vm2699_vm8 = vcmp.eq.s32.totalorder %v3520_v11, 4 }
0x1d65   :  { %v2668_v25 = vsel %vm2625_vm15, %v2667_v32, 0  ;;  %v1654_v13 = vrot.slane %v1653_v9, 2 }
0x1d66   :  { %v2670_v0 = vshrl.u32 %v2668_v25, 16  ;;  %v2669_v36 = vand.u32 65535, %v2668_v25 }
0x1d67   :  { %vm1655_vm5 = vcmp.lt.s32.totalorder %v1653_v9, %v1654_v13 }
0x1d68   :  { %v2672_v33 = vcvt.s32.f32 %v2670_v0  ;;  %v2671_v38 = vcvt.s32.f32 %v2669_v36  ;;  %v1656_v12 = vsel %vm1655_vm5, %v1653_v9, %v1654_v13 }
0x1d69   :  { %v1657_v15 = vrot.slane %v1656_v12, 1 }
0x1d6a   :  { %2675 = vadd.xlane.f32.xlu1 %v2672_v33 }
0x1d6b   :  { %vm1658_vm0 = vcmp.lt.s32.totalorder %v1656_v12, %v1657_v15 }
0x1d6c   :  { %v4082_v10 = vsel %vm1658_vm0, %v1656_v12, %v1657_v15 }
0x1d6e   :  { %2673 = vadd.xlane.f32.xlu1 %v2671_v38 }
0x1df7   :  { %v2676_v44 = vpop.xlane.xlu1 %2675 }
0x1df8   :  { %v2678_v35 = vcvt.f32.s32 %v2676_v44 }
0x1dfa   :  { %v2679_v48 = vshll.u32 %v2678_v35, 16 }
0x1dfb   :  { %v2674_v47 = vpop.xlane.xlu1 %2673 }
0x1dfc   :  { %v2677_v49 = vcvt.f32.s32 %v2674_v47 }
0x1dfe   :  { %v2680_v51 = vadd.s32 %v2679_v48, %v2677_v49 }
0x1e00   :  { %v2682_v40 = vsel %vm2681_vm3, %v2680_v51, 0  ;;  %vm2684_vm14 = vcmp.eq.s32.totalorder %v3520_v11, %v2680_v51  ;;  %vm2717_vm3 = vcmp.eq.s32.totalorder %v3520_v11, 3 }
0x1e01   :  { %v2683_v57 = vadd.s32 %v2682_v40, %v2665_v7  ;;  %v2685_v58 = vsel %vm2684_vm14, %v4070_v37, 0  ;;  %vm1337_vm14 = vcmp.lt.s32.totalorder %v1335_v1, %v1336_v46 }
0x1e02   :  { %v2686_v31 = vsel %vm2625_vm15, %v2685_v58, 0  ;;  %v1338_v53 = vsel %vm1337_vm14, %v1335_v1, %v1336_v46  ;;  %vm2821_vm14 = vcmask 64512  }
0x1e03   :  { %v2688_v26 = vshrl.u32 %v2686_v31, 16  ;;  %v2687_v60 = vand.u32 65535, %v2686_v31 }
0x1e05   :  { %v2690_v59 = vcvt.s32.f32 %v2688_v26  ;;  %v2689_v19 = vcvt.s32.f32 %v2687_v60 }
0x1e07   :  { %2693 = vadd.xlane.f32.xlu1 %v2690_v59 }
0x1e0b   :  { %2691 = vadd.xlane.f32.xlu1 %v2689_v19  ;;  %v1007_v19 = vsel %vm1006_vm9, %v3865_v5, 4 }
0x1e0c   :  { %v1008_v4 = vsel %vm359_vm11, %v1007_v19, 2147483647  ;;  %vm2753_vm11 = vcmp.eq.s32.totalorder %v3520_v11, 1 }
0x1e0d   :  { %v1009_v2 = vrot.slane %v1008_v4, 4 }
0x1e0f   :  { %vm1010_vm4 = vcmp.lt.s32.totalorder %v1008_v4, %v1009_v2 }
0x1e10   :  { %v1011_v62 = vsel %vm1010_vm4, %v1008_v4, %v1009_v2  ;;  %vm2832_vm4 = vcmask 130048  }
0x1e11   :  { %v1012_v9 = vrot.slane %v1011_v62, 2 }
0x1e13   :  { %vm1013_vm5 = vcmp.lt.s32.totalorder %v1011_v62, %v1012_v9 }
0x1e14   :  { %v1014_v13 = vsel %vm1013_vm5, %v1011_v62, %v1012_v9 }
0x1e94   :  { %v2694_v8 = vpop.xlane.xlu1 %2693 }
0x1e95   :  { %v2696_v30 = vcvt.f32.s32 %v2694_v8 }
0x1e97   :  { %v2697_v41 = vshll.u32 %v2696_v30, 16  ;;  %v1015_v30 = vrot.slane %v1014_v13, 1 }
0x1e98   :  { %v2692_v20 = vpop.xlane.xlu1 %2691 }
0x1e99   :  { %v2695_v56 = vcvt.f32.s32 %v2692_v20  ;;  %vm1016_vm0 = vcmp.lt.s32.totalorder %v1014_v13, %v1015_v30 }
0x1e9a   :  { %v1017_v5 = vsel %vm1016_vm0, %v1014_v13, %v1015_v30 }
0x1e9b   :  { %v2698_v63 = vadd.s32 %v2697_v41, %v2695_v56 }
0x1e9d   :  { %v2700_v18 = vsel %vm2699_vm8, %v2698_v63, 0  ;;  %vm2702_vm13 = vcmp.eq.s32.totalorder %v3520_v11, %v2698_v63  ;;  %vm2735_vm8 = vcmp.eq.s32.totalorder %v3520_v11, 2 }
0x1e9e   :  { %v2701_v7 = vadd.s32 %v2700_v18, %v2683_v57  ;;  %v2703_v32 = vsel %vm2702_vm13, %v4082_v10, 0 }
0x1e9f   :  { %v2704_v25 = vsel %vm2625_vm15, %v2703_v32, 0 }
0x1ea0   :  { %v2706_v0 = vshrl.u32 %v2704_v25, 16  ;;  %v2705_v33 = vand.u32 65535, %v2704_v25 }
0x1ea2   :  { %v2708_v36 = vcvt.s32.f32 %v2706_v0  ;;  %v2707_v38 = vcvt.s32.f32 %v2705_v33 }
0x1ea4   :  { %2711 = vadd.xlane.f32.xlu0 %v2708_v36  ;;  %2709 = vadd.xlane.f32.xlu1 %v2707_v38 }
0x1f31   :  { %v2712_v44 = vpop.xlane.xlu0 %2711  ;;  %v2710_v35 = vpop.xlane.xlu1 %2709 }
0x1f32   :  { %v2714_v47 = vcvt.f32.s32 %v2712_v44  ;;  %v2713_v49 = vcvt.f32.s32 %v2710_v35 }
0x1f34   :  { %v2715_v48 = vshll.u32 %v2714_v47, 16 }
0x1f36   :  { %v2716_v51 = vadd.s32 %v2715_v48, %v2713_v49  ;;  %v2808_v49 = vsel %vm70_vm1, %v3922_v61, %v1017_v5  ;;  %v2775_v61 = vrot.slane %v3909_v14, 7 }
0x1f38   :  { %v2718_v45 = vsel %vm2717_vm3, %v2716_v51, 0  ;;  %vm2720_vm10 = vcmp.eq.s32.totalorder %v3520_v11, %v2716_v51  ;;  %v2809_v51 = vsel %vm2798_vm12, %v2808_v49, %v1338_v53  ;;  %vm2803_vm3 = vcmask 1045504  }
0x1f39   :  { %v2719_v40 = vadd.s32 %v2718_v45, %v2701_v7  ;;  %v2721_v57 = vsel %vm2720_vm10, %v1338_v53, 0  ;;  %v2810_v45 = vsel %vm180_vm7, %v2809_v51, %v4082_v10  ;;  %v2778_v53 = vrot.slane %v3934_v3, 6 }
0x1f3a   :  { %v2722_v58 = vsel %vm2625_vm15, %v2721_v57, 0  ;;  %v2781_v10 = vrot.slane %v3955_v52, 5  ;;  %vm2819_vm10 = vcmask 31744  }
0x1f3b   :  { %v2724_v31 = vshrl.u32 %v2722_v58, 16  ;;  %v2723_v26 = vand.u32 65535, %v2722_v58  ;;  %v2828_v30 = vsel %vm2819_vm10, %v4034_v22, %v4038_v27 }
0x1f3d   :  { %v2726_v59 = vcvt.s32.f32 %v2724_v31  ;;  %v2725_v60 = vcvt.s32.f32 %v2723_v26  ;;  %v2784_v31 = vrot.slane %v3976_v55, 4  ;;  %v2787_v26 = vrot.slane %v3996_v34, 3 }
0x1f3f   :  { %2729 = vadd.xlane.f32.xlu0 %v2726_v59  ;;  %2727 = vadd.xlane.f32.xlu1 %v2725_v60  ;;  %v2793_v60 = vrot.slane %v4031_v29, 1 }
0x1fcc   :  { %v2730_v12 = vpop.xlane.xlu0 %2729  ;;  %v2728_v8 = vpop.xlane.xlu1 %2727 }
0x1fcd   :  { %v2732_v15 = vcvt.f32.s32 %v2730_v12  ;;  %v2731_v41 = vcvt.f32.s32 %v2728_v8 }
0x1fcf   :  { %v2733_v20 = vshll.u32 %v2732_v15, 16 }
0x1fd1   :  { %v2734_v56 = vadd.s32 %v2733_v20, %v2731_v41 }
0x1fd3   :  { %v2736_v24 = vsel %vm2735_vm8, %v2734_v56, 0  ;;  %vm2738_vm9 = vcmp.eq.s32.totalorder %v3520_v11, %v2734_v56 }
0x1fd4   :  { %v2737_v16 = vadd.s32 %v2736_v24, %v2719_v40  ;;  %v2739_v63 = vsel %vm2738_vm9, %v1017_v5, 0 }
0x1fd5   :  { %v2740_v18 = vsel %vm2625_vm15, %v2739_v63, 0 }
0x1fd6   :  { %v2742_v7 = vshrl.u32 %v2740_v18, 16  ;;  %v2741_v32 = vand.u32 65535, %v2740_v18 }
0x1fd8   :  { %v2744_v25 = vcvt.s32.f32 %v2742_v7  ;;  %v2743_v0 = vcvt.s32.f32 %v2741_v32 }
0x1fda   :  { %2747 = vadd.xlane.f32.xlu0 %v2744_v25  ;;  %2745 = vadd.xlane.f32.xlu1 %v2743_v0 }
0x2067   :  { %v2748_v33 = vpop.xlane.xlu0 %2747  ;;  %v2746_v36 = vpop.xlane.xlu1 %2745 }
0x2068   :  { %v2750_v38 = vcvt.f32.s32 %v2748_v33  ;;  %v2749_v39 = vcvt.f32.s32 %v2746_v36 }
0x206a   :  { %v2751_v21 = vshll.u32 %v2750_v38, 16 }
0x206c   :  { %v2752_v42 = vadd.s32 %v2751_v21, %v2749_v39 }
0x206e   :  { %v2754_v28 = vsel %vm2753_vm11, %v2752_v42, 0  ;;  %vm2756_vm13 = vcmp.eq.s32.totalorder %v3520_v11, %v2752_v42 }
0x206f   :  { %v2755_v43 = vadd.s32 %v2754_v28, %v2737_v16  ;;  %v2757_v1 = vsel %vm2756_vm13, %v3918_v6, 0  ;;  %v2811_v6 = vsel %vm2801_vm2, %v2810_v45, %v4070_v37  ;;  %v2796_v37 = vsel %vm2795_vm6, %v3879_v23, %v2775_v61 }
0x2070   :  { %v2758_v44 = vsel %vm2625_vm15, %v2757_v1, 0  ;;  %vm2805_vm15 = vcmask 1046528   ;;  %v2812_v40 = vsel %vm2803_vm3, %v2811_v6, %v4060_v17  ;;  %v2797_v17 = vsel %vm70_vm1, %v2796_v37, %v2778_v53 }
0x2071   :  { %v2760_v35 = vshrl.u32 %v2758_v44, 16  ;;  %v2759_v46 = vand.u32 65535, %v2758_v44  ;;  %v2813_v57 = vsel %vm2805_vm15, %v2812_v40, %v4048_v50  ;;  %v2790_v50 = vrot.slane %v4016_v54, 2 }
0x2072   :  { %v2814_v58 = vcvt.s32.f32 %v2813_v57  ;;  %v2799_v59 = vsel %vm2798_vm12, %v2797_v17, %v2781_v10  ;;  %vm2771_vm1 = vcmp.eq.s32.totalorder %v3520_v11, 0 }
0x2073   :  { %v2762_v47 = vcvt.s32.f32 %v2760_v35  ;;  %v2761_v48 = vcvt.s32.f32 %v2759_v46  ;;  %v2800_v3 = vsel %vm180_vm7, %v2799_v59, %v2784_v31  ;;  %vm2829_vm7 = vcmask 39936  }
0x2074   :  { %v2802_v55 = vsel %vm2801_vm2, %v2800_v3, %v2787_v26  ;;  %v2830_v11 = vsel %vm2829_vm7, %v2828_v30, 0.0 }
0x2075   :  { %2765 = vadd.xlane.f32.xlu0 %v2762_v47  ;;  %2763 = vadd.xlane.f32.xlu1 %v2761_v48  ;;  %v2804_v23 = vsel %vm2803_vm3, %v2802_v55, %v2790_v50 }
0x2076   :  { %v2806_v34 = vsel %vm2805_vm15, %v2804_v23, %v2793_v60 }
0x208b   :  { %2816 = vrot.lane.b32.xlu0 %v2814_v58, %s3464_s27 }
0x2102   :  { %v2766_v14 = vpop.xlane.xlu0 %2765  ;;  %v2764_v19 = vpop.xlane.xlu1 %2763 }
0x2103   :  { %v2768_v52 = vcvt.f32.s32 %v2766_v14  ;;  %v2767_v2 = vcvt.f32.s32 %v2764_v19 }
0x2105   :  { %v2769_v4 = vshll.u32 %v2768_v52, 16 }
0x2106   :  { %v2817_v54 = vpop.permute.xlu0 %2816 }
0x2107   :  { %v2770_v62 = vadd.s32 %v2769_v4, %v2767_v2  ;;  %v2820_v29 = vsel %vm2819_vm10, %v2806_v34, %v2817_v54 }
0x2108   :  { %v2822_v9 = vsel %vm2821_vm14, %v2820_v29, 0.0 }
0x2109   :  { %v2772_v13 = vsel %vm2771_vm1, %v2770_v62, 0  ;;  %2835 = vst [vmem:[#allocation5] sm:$0xff] %v2822_v9 }
0x210a   :  { %v2773_v12 = vadd.s32 %v2772_v13, %v2755_v43 }
0x210c   :  { %v2823_v8 = vcvt.s32.f32 %v2773_v12 }
0x210e   :  { %2825 = vrot.lane.b32.xlu1 %v2823_v8, %s3452_s20 }
0x2180   :  { %v2826_v15 = vpop.permute.xlu1 %2825 }
0x2181   :  { %v2831_v20 = vsel %vm2821_vm14, %v2830_v11, %v2826_v15 }
0x2182   :  { %v2833_v41 = vsel %vm2832_vm4, %v2831_v20, 0.0 }
0x2183   :  { %v2834_v56 = vsel %vm2795_vm6, %v2833_v41, 0.0 }
0x2184   :  { %2836 = vst [vmem:[#allocation5 + $0x8] sm:$0xff] %v2834_v56 }
0x2185   :  { %3435 = shalt.err (!%p3432_p12)
}
0x2186   :  { %s3436_s5 = scalar_lea.hbm %s4156_s2, 256 }
0x2187   :  { %p3437_p13 = scmp.ne.s32.totalorder %s4156_s2, %s3436_s5  ;;  %p3440_p0 = scmp.lt.u32.totalorder %s3436_s5, %s4156_s2 }
0x2189   :  { %p3442_p1 = pnand %p3440_p0, %p3437_p13 }
0x218b   :  { %3445 = shalt.err (!%p3442_p1)
}
0x218c   :  { %2848 = dma.vmem_to_hbm [thread:$0]  %s2843_s29, 256, %s4156_s2, [#allocation4], %s3451_s19, %s3451_s19, %s3452_s20  }
0x218d   :  { %3448 = dma.done.wait [#allocation4], 256  }
0x218e   :  { %3449 = vsyncadd [#allocation4], 4294967040 }
0x218f   :  { %2852 = vsyncpa [#allocation3], 1 }
0x2190   :  { %2853 = vsyncpa [#allocation4], 1 }

</bundles_post_ra>
